<compile_context>
chip_gen: v7x
topology: tpu7x:2x2x1
jax: 0.10.0
libtpu: 0.0.40
codegen_flags: <defaults>
</compile_context>

<pallas_src>
import functools

import jax
import jax.numpy as jnp
import numpy as np
from jax.experimental import pallas as pl
from jax.experimental.pallas import tpu as pltpu


def _glove_kernel(center_smem, outside_smem, coocs_ref, w_ref,
                  wc_hbm, wo_hbm, out_ref, ce_buf, oe_buf, sems,
                  *, inv_batch):
    i = pl.program_id(0)
    n_tiles = pl.num_programs(0)
    b_tile = ce_buf.shape[1]

    def issue_gather(tile_idx, slot):
        base = tile_idx * b_tile
        for b in range(b_tile):
            c_idx = center_smem[base + b]
            o_idx = outside_smem[base + b]
            pltpu.make_async_copy(wc_hbm.at[c_idx], ce_buf.at[slot, b],
                                  sems.at[slot, 0, b]).start()
            pltpu.make_async_copy(wo_hbm.at[o_idx], oe_buf.at[slot, b],
                                  sems.at[slot, 1, b]).start()

    def wait_gather(slot):
        for b in range(b_tile):
            pltpu.make_async_copy(wc_hbm.at[0], ce_buf.at[slot, b],
                                  sems.at[slot, 0, b]).wait()
            pltpu.make_async_copy(wo_hbm.at[0], oe_buf.at[slot, b],
                                  sems.at[slot, 1, b]).wait()

    slot = i % 2

    @pl.when(i == 0)
    def _():
        out_ref[...] = jnp.zeros_like(out_ref)
        issue_gather(0, 0)                       # prime the pipeline

    wait_gather(slot)                            # rows for this tile are ready

    @pl.when(i + 1 < n_tiles)
    def _():
        issue_gather(i + 1, 1 - slot)            # prefetch next tile's rows

    ce = ce_buf[slot]                            # (b_tile, E_PAD) gathered center rows
    oe = oe_buf[slot]                            # (b_tile, E_PAD) gathered outside rows

    # Fused prediction: inner product + center bias + outside bias
    # (bias / ones columns were baked into the augmented tables).
    pred = jnp.sum(ce * oe, axis=1, keepdims=True)           # (b_tile, 1)
    diff = pred - jnp.log(coocs_ref[...])                    # (b_tile, 1)
    loss = w_ref[...] * diff * diff                          # (b_tile, 1)
    out_ref[...] += jnp.sum(loss, axis=(0, 1), keepdims=True)

    @pl.when(i == n_tiles - 1)
    def _():
        out_ref[...] = out_ref[...] * inv_batch               # mean over real batch


def glove_forward(center, outside, coocs, weighting, params, *, b_tile=8):
    """Pallas implementation of GloVe.forward; returns the scalar mean loss."""
    assert b_tile % 8 == 0
    wc, wo, bc, bo = params
    V, E = wc.shape
    B = int(np.prod(center.shape))               # number of (center, outside) pairs

    # ---- fuse biases into the tables; pad feature axis to a 128-lane multiple ----
    e_pad = pl.cdiv(E + 2, 128) * 128
    ones = jnp.ones((V, 1), jnp.float32)
    zpad = jnp.zeros((V, e_pad - (E + 2)), jnp.float32)
    wc_aug = jnp.concatenate(
        [wc.astype(jnp.float32), bc.astype(jnp.float32), ones, zpad], axis=1)
    wo_aug = jnp.concatenate(
        [wo.astype(jnp.float32), ones, bo.astype(jnp.float32), zpad], axis=1)

    # ---- pad batch to a tile multiple; padded rows contribute exactly zero ----
    n_tiles = pl.cdiv(B, b_tile)
    b_padded = n_tiles * b_tile
    npad = b_padded - B

    def pad1d(x, value, dtype):
        x = x.reshape(-1).astype(dtype)
        return jnp.concatenate([x, jnp.full((npad,), value, dtype)])

    center_f = pad1d(center, 0, jnp.int32)                        # (b_padded,)
    outside_f = pad1d(outside, 0, jnp.int32)                      # (b_padded,)
    coocs_f = pad1d(coocs, 1.0, jnp.float32).reshape(b_padded, 1)  # log(1) = 0
    w_f = pad1d(weighting, 0.0, jnp.float32).reshape(b_padded, 1)  # zero weight

    kernel = functools.partial(_glove_kernel, inv_batch=1.0 / B)

    grid_spec = pltpu.PrefetchScalarGridSpec(
        num_scalar_prefetch=2,                     # center, outside -> SMEM
        grid=(n_tiles,),
        in_specs=[
            pl.BlockSpec((b_tile, 1), lambda i, c, o: (i, 0)),    # coocs tile
            pl.BlockSpec((b_tile, 1), lambda i, c, o: (i, 0)),    # weighting tile
            pl.BlockSpec(memory_space=pl.ANY),                    # wc_aug stays in HBM
            pl.BlockSpec(memory_space=pl.ANY),                    # wo_aug stays in HBM
        ],
        out_specs=pl.BlockSpec((1, 1), lambda i, c, o: (0, 0)),   # resident accumulator
        scratch_shapes=[
            pltpu.VMEM((2, b_tile, e_pad), jnp.float32),          # gathered center rows
            pltpu.VMEM((2, b_tile, e_pad), jnp.float32),          # gathered outside rows
            pltpu.SemaphoreType.DMA((2, 2, b_tile)),              # per-row DMA sems
        ],
    )

    out = pl.pallas_call(
        kernel,
        out_shape=jax.ShapeDtypeStruct((1, 1), jnp.float32),
        grid_spec=grid_spec,
        compiler_params=pltpu.CompilerParams(
            dimension_semantics=("arbitrary",)),   # accumulator + cross-step DMAs
    )(center_f, outside_f, coocs_f, w_f, wc_aug, wo_aug)
    return out[0, 0]


def glove_ref(center, outside, coocs, weighting, params):
    """Pure-JAX reference mirroring the PyTorch module exactly (center: (B, 1))."""
    wc, wo, bc, bo = params
    ce = wc[center]                                   # (B, 1, E)
    oe = wo[outside]                                  # (B, 1, E)
    cb = jnp.squeeze(bc[center])                      # (B,)
    ob = jnp.squeeze(bo[outside])                     # (B,)
    inner = jnp.squeeze(jnp.sum(ce * oe, axis=2))     # (B,)
    pred = inner + cb + ob
    loss = weighting * jnp.square(pred - jnp.log(coocs))
    return jnp.mean(loss)


if __name__ == "__main__":
    V, E, B = 64, 32, 20   # voc_size, emb_size, batch (deliberately not a tile multiple)

    key = jax.random.PRNGKey(0)
    k_wc, k_wo, k_bc, k_bo, k_c, k_o, k_x, k_w = jax.random.split(key, 8)

    wc = jax.random.normal(k_wc, (V, E), dtype=jnp.float32)
    wo = jax.random.normal(k_wo, (V, E), dtype=jnp.float32)
    bc = jax.random.normal(k_bc, (V, 1), dtype=jnp.float32)
    bo = jax.random.normal(k_bo, (V, 1), dtype=jnp.float32)
    params = (wc, wo, bc, bo)

    center = jax.random.randint(k_c, (B, 1), 0, V, dtype=jnp.int32)
    outside = jax.random.randint(k_o, (B, 1), 0, V, dtype=jnp.int32)
    coocs = jax.random.uniform(k_x, (B,), minval=1.0, maxval=10.0, dtype=jnp.float32)
    weighting = jax.random.uniform(k_w, (B,), minval=0.1, maxval=1.0, dtype=jnp.float32)

    out = jax.block_until_ready(glove_forward(center, outside, coocs, weighting, params))
    ref = jax.block_until_ready(glove_ref(center, outside, coocs, weighting, params))

    np.testing.assert_allclose(np.asarray(out), np.asarray(ref), rtol=1e-3, atol=1e-3)
    print("KERNEL_OK")
</pallas_src>

<mosaic_0001>
module attributes {stable_mosaic.version = 11 : i64} {
  func.func @_glove_kernel(%arg0: i32, %arg1: memref<24xi32, #tpu.memory_space<smem>>, %arg2: memref<24xi32, #tpu.memory_space<smem>>, %arg3: memref<8x1xf32, #tpu.memory_space<vmem>>, %arg4: memref<8x1xf32, #tpu.memory_space<vmem>>, %arg5: memref<64x128xf32, #tpu.memory_space<any>>, %arg6: memref<64x128xf32, #tpu.memory_space<any>>, %arg7: memref<1x1xf32, #tpu.memory_space<vmem>>, %arg8: memref<2x8x128xf32, #tpu.memory_space<vmem>>, %arg9: memref<2x8x128xf32, #tpu.memory_space<vmem>>, %arg10: memref<2x2x8x!tpu.dma_semaphore, #tpu.memory_space<semaphore_mem>>) attributes {dimension_semantics = [#tpu.dimension_semantics<arbitrary>], iteration_bounds = array<i64: 3>, scalar_prefetch = 2 : i64, scratch_operands = 3 : i64, tpu.core_type = #tpu.core_type<tc>, window_params = [{transform_indices = @transform_0, window_bounds = array<i64: 8, 1>}, {transform_indices = @transform_1, window_bounds = array<i64: 8, 1>}, {}, {}, {pipeline_mode = #tpu.pipeline_mode<synchronous>, transform_indices = @transform_4, window_bounds = array<i64: 1, 1>}]} {
    %c2_i32 = arith.constant 2 : i32
    %c0_i32 = arith.constant 0 : i32
    %0 = arith.cmpi eq, %c2_i32, %c0_i32 : i32
    %c1_i32 = arith.constant 1 : i32
    %1 = arith.select %0, %c1_i32, %c2_i32 : i32
    %2 = arith.remsi %arg0, %1 : i32
    %c0_i32_0 = arith.constant 0 : i32
    %3 = arith.cmpi ne, %2, %c0_i32_0 : i32
    %c0_i32_1 = arith.constant 0 : i32
    %4 = arith.cmpi slt, %2, %c0_i32_1 : i32
    %c0_i32_2 = arith.constant 0 : i32
    %5 = arith.cmpi slt, %1, %c0_i32_2 : i32
    %6 = arith.xori %4, %5 : i1
    %7 = arith.andi %6, %3 : i1
    %8 = arith.addi %2, %1 : i32
    %9 = arith.select %7, %8, %2 : i32
    %c0_i32_3 = arith.constant 0 : i32
    %10 = arith.cmpi eq, %arg0, %c0_i32_3 : i32
    %11 = arith.extui %10 : i1 to i32
    %c0_i32_4 = arith.constant 0 : i32
    %12 = arith.cmpi ne, %11, %c0_i32_4 : i32
    scf.if %12 {
      %cst_113 = arith.constant 0.000000e+00 : f32
      %139 = vector.broadcast %cst_113 : f32 to vector<1x1xf32>
      %c0_114 = arith.constant 0 : index
      %c0_115 = arith.constant 0 : index
      %140 = vector.load %arg7[%c0_114, %c0_115] : memref<1x1xf32, #tpu.memory_space<vmem>>, vector<1x1xf32>
      tpu.vector_store %arg7[%c0_114, %c0_115], %139 {strides = array<i32>} : memref<1x1xf32, #tpu.memory_space<vmem>>, vector<1x1xf32>,
      %c0_116 = arith.constant 0 : index
      %141 = memref.load %arg1[%c0_116] : memref<24xi32, #tpu.memory_space<smem>>
      %c0_117 = arith.constant 0 : index
      %142 = memref.load %arg2[%c0_117] : memref<24xi32, #tpu.memory_space<smem>>
      %c0_i32_118 = arith.constant 0 : i32
      %c0_i32_119 = arith.constant 0 : i32
      %c0_i32_120 = arith.constant 0 : i32
      %c0_i32_121 = arith.constant 0 : i32
      %c0_i32_122 = arith.constant 0 : i32
      %c0_i32_123 = arith.constant 0 : i32
      %143 = tpu.memref_slice %arg5[%141, %c0_i32_123] : memref<64x128xf32, #tpu.memory_space<any>> -> memref<1x128xf32, #tpu.memory_space<any>>
      %144 = tpu.memref_squeeze %143 : memref<1x128xf32, #tpu.memory_space<any>> -> memref<128xf32, #tpu.memory_space<any>>
      %c0_i32_124 = arith.constant 0 : i32
      %145 = tpu.memref_slice %arg8[%c0_i32_118, %c0_i32_119, %c0_i32_124] : memref<2x8x128xf32, #tpu.memory_space<vmem>> -> memref<1x1x128xf32, #tpu.memory_space<vmem>>
      %146 = tpu.memref_squeeze %145 : memref<1x1x128xf32, #tpu.memory_space<vmem>> -> memref<128xf32, #tpu.memory_space<vmem>>
      %147 = tpu.memref_slice %arg10[%c0_i32_120, %c0_i32_121, %c0_i32_122] : memref<2x2x8x!tpu.dma_semaphore, #tpu.memory_space<semaphore_mem>> -> memref<1x1x1x!tpu.dma_semaphore, #tpu.memory_space<semaphore_mem>>
      %148 = tpu.memref_squeeze %147 : memref<1x1x1x!tpu.dma_semaphore, #tpu.memory_space<semaphore_mem>> -> memref<!tpu.dma_semaphore, #tpu.memory_space<semaphore_mem>>
      tpu.enqueue_dma source(%144 : memref<128xf32, #tpu.memory_space<any>>) target(%146 : memref<128xf32, #tpu.memory_space<vmem>>) target_semaphore(%148 : memref<!tpu.dma_semaphore, #tpu.memory_space<semaphore_mem>>)
      %c0_i32_125 = arith.constant 0 : i32
      %c0_i32_126 = arith.constant 0 : i32
      %c0_i32_127 = arith.constant 0 : i32
      %c1_i32_128 = arith.constant 1 : i32
      %c0_i32_129 = arith.constant 0 : i32
      %c0_i32_130 = arith.constant 0 : i32
      %149 = tpu.memref_slice %arg6[%142, %c0_i32_130] : memref<64x128xf32, #tpu.memory_space<any>> -> memref<1x128xf32, #tpu.memory_space<any>>
      %150 = tpu.memref_squeeze %149 : memref<1x128xf32, #tpu.memory_space<any>> -> memref<128xf32, #tpu.memory_space<any>>
      %c0_i32_131 = arith.constant 0 : i32
      %151 = tpu.memref_slice %arg9[%c0_i32_125, %c0_i32_126, %c0_i32_131] : memref<2x8x128xf32, #tpu.memory_space<vmem>> -> memref<1x1x128xf32, #tpu.memory_space<vmem>>
      %152 = tpu.memref_squeeze %151 : memref<1x1x128xf32, #tpu.memory_space<vmem>> -> memref<128xf32, #tpu.memory_space<vmem>>
      %153 = tpu.memref_slice %arg10[%c0_i32_127, %c1_i32_128, %c0_i32_129] : memref<2x2x8x!tpu.dma_semaphore, #tpu.memory_space<semaphore_mem>> -> memref<1x1x1x!tpu.dma_semaphore, #tpu.memory_space<semaphore_mem>>
      %154 = tpu.memref_squeeze %153 : memref<1x1x1x!tpu.dma_semaphore, #tpu.memory_space<semaphore_mem>> -> memref<!tpu.dma_semaphore, #tpu.memory_space<semaphore_mem>>
      tpu.enqueue_dma source(%150 : memref<128xf32, #tpu.memory_space<any>>) target(%152 : memref<128xf32, #tpu.memory_space<vmem>>) target_semaphore(%154 : memref<!tpu.dma_semaphore, #tpu.memory_space<semaphore_mem>>)
      %c1 = arith.constant 1 : index
      %155 = memref.load %arg1[%c1] : memref<24xi32, #tpu.memory_space<smem>>
      %c1_132 = arith.constant 1 : index
      %156 = memref.load %arg2[%c1_132] : memref<24xi32, #tpu.memory_space<smem>>
      %c0_i32_133 = arith.constant 0 : i32
      %c1_i32_134 = arith.constant 1 : i32
      %c0_i32_135 = arith.constant 0 : i32
      %c0_i32_136 = arith.constant 0 : i32
      %c1_i32_137 = arith.constant 1 : i32
      %c0_i32_138 = arith.constant 0 : i32
      %157 = tpu.memref_slice %arg5[%155, %c0_i32_138] : memref<64x128xf32, #tpu.memory_space<any>> -> memref<1x128xf32, #tpu.memory_space<any>>
      %158 = tpu.memref_squeeze %157 : memref<1x128xf32, #tpu.memory_space<any>> -> memref<128xf32, #tpu.memory_space<any>>
      %c0_i32_139 = arith.constant 0 : i32
      %159 = tpu.memref_slice %arg8[%c0_i32_133, %c1_i32_134, %c0_i32_139] : memref<2x8x128xf32, #tpu.memory_space<vmem>> -> memref<1x1x128xf32, #tpu.memory_space<vmem>>
      %160 = tpu.memref_squeeze %159 : memref<1x1x128xf32, #tpu.memory_space<vmem>> -> memref<128xf32, #tpu.memory_space<vmem>>
      %161 = tpu.memref_slice %arg10[%c0_i32_135, %c0_i32_136, %c1_i32_137] : memref<2x2x8x!tpu.dma_semaphore, #tpu.memory_space<semaphore_mem>> -> memref<1x1x1x!tpu.dma_semaphore, #tpu.memory_space<semaphore_mem>>
      %162 = tpu.memref_squeeze %161 : memref<1x1x1x!tpu.dma_semaphore, #tpu.memory_space<semaphore_mem>> -> memref<!tpu.dma_semaphore, #tpu.memory_space<semaphore_mem>>
      tpu.enqueue_dma source(%158 : memref<128xf32, #tpu.memory_space<any>>) target(%160 : memref<128xf32, #tpu.memory_space<vmem>>) target_semaphore(%162 : memref<!tpu.dma_semaphore, #tpu.memory_space<semaphore_mem>>)
      %c0_i32_140 = arith.constant 0 : i32
      %c1_i32_141 = arith.constant 1 : i32
      %c0_i32_142 = arith.constant 0 : i32
      %c1_i32_143 = arith.constant 1 : i32
      %c1_i32_144 = arith.constant 1 : i32
      %c0_i32_145 = arith.constant 0 : i32
      %163 = tpu.memref_slice %arg6[%156, %c0_i32_145] : memref<64x128xf32, #tpu.memory_space<any>> -> memref<1x128xf32, #tpu.memory_space<any>>
      %164 = tpu.memref_squeeze %163 : memref<1x128xf32, #tpu.memory_space<any>> -> memref<128xf32, #tpu.memory_space<any>>
      %c0_i32_146 = arith.constant 0 : i32
      %165 = tpu.memref_slice %arg9[%c0_i32_140, %c1_i32_141, %c0_i32_146] : memref<2x8x128xf32, #tpu.memory_space<vmem>> -> memref<1x1x128xf32, #tpu.memory_space<vmem>>
      %166 = tpu.memref_squeeze %165 : memref<1x1x128xf32, #tpu.memory_space<vmem>> -> memref<128xf32, #tpu.memory_space<vmem>>
      %167 = tpu.memref_slice %arg10[%c0_i32_142, %c1_i32_143, %c1_i32_144] : memref<2x2x8x!tpu.dma_semaphore, #tpu.memory_space<semaphore_mem>> -> memref<1x1x1x!tpu.dma_semaphore, #tpu.memory_space<semaphore_mem>>
      %168 = tpu.memref_squeeze %167 : memref<1x1x1x!tpu.dma_semaphore, #tpu.memory_space<semaphore_mem>> -> memref<!tpu.dma_semaphore, #tpu.memory_space<semaphore_mem>>
      tpu.enqueue_dma source(%164 : memref<128xf32, #tpu.memory_space<any>>) target(%166 : memref<128xf32, #tpu.memory_space<vmem>>) target_semaphore(%168 : memref<!tpu.dma_semaphore, #tpu.memory_space<semaphore_mem>>)
      %c2 = arith.constant 2 : index
      %169 = memref.load %arg1[%c2] : memref<24xi32, #tpu.memory_space<smem>>
      %c2_147 = arith.constant 2 : index
      %170 = memref.load %arg2[%c2_147] : memref<24xi32, #tpu.memory_space<smem>>
      %c0_i32_148 = arith.constant 0 : i32
      %c2_i32_149 = arith.constant 2 : i32
      %c0_i32_150 = arith.constant 0 : i32
      %c0_i32_151 = arith.constant 0 : i32
      %c2_i32_152 = arith.constant 2 : i32
      %c0_i32_153 = arith.constant 0 : i32
      %171 = tpu.memref_slice %arg5[%169, %c0_i32_153] : memref<64x128xf32, #tpu.memory_space<any>> -> memref<1x128xf32, #tpu.memory_space<any>>
      %172 = tpu.memref_squeeze %171 : memref<1x128xf32, #tpu.memory_space<any>> -> memref<128xf32, #tpu.memory_space<any>>
      %c0_i32_154 = arith.constant 0 : i32
      %173 = tpu.memref_slice %arg8[%c0_i32_148, %c2_i32_149, %c0_i32_154] : memref<2x8x128xf32, #tpu.memory_space<vmem>> -> memref<1x1x128xf32, #tpu.memory_space<vmem>>
      %174 = tpu.memref_squeeze %173 : memref<1x1x128xf32, #tpu.memory_space<vmem>> -> memref<128xf32, #tpu.memory_space<vmem>>
      %175 = tpu.memref_slice %arg10[%c0_i32_150, %c0_i32_151, %c2_i32_152] : memref<2x2x8x!tpu.dma_semaphore, #tpu.memory_space<semaphore_mem>> -> memref<1x1x1x!tpu.dma_semaphore, #tpu.memory_space<semaphore_mem>>
      %176 = tpu.memref_squeeze %175 : memref<1x1x1x!tpu.dma_semaphore, #tpu.memory_space<semaphore_mem>> -> memref<!tpu.dma_semaphore, #tpu.memory_space<semaphore_mem>>
      tpu.enqueue_dma source(%172 : memref<128xf32, #tpu.memory_space<any>>) target(%174 : memref<128xf32, #tpu.memory_space<vmem>>) target_semaphore(%176 : memref<!tpu.dma_semaphore, #tpu.memory_space<semaphore_mem>>)
      %c0_i32_155 = arith.constant 0 : i32
      %c2_i32_156 = arith.constant 2 : i32
      %c0_i32_157 = arith.constant 0 : i32
      %c1_i32_158 = arith.constant 1 : i32
      %c2_i32_159 = arith.constant 2 : i32
      %c0_i32_160 = arith.constant 0 : i32
      %177 = tpu.memref_slice %arg6[%170, %c0_i32_160] : memref<64x128xf32, #tpu.memory_space<any>> -> memref<1x128xf32, #tpu.memory_space<any>>
      %178 = tpu.memref_squeeze %177 : memref<1x128xf32, #tpu.memory_space<any>> -> memref<128xf32, #tpu.memory_space<any>>
      %c0_i32_161 = arith.constant 0 : i32
      %179 = tpu.memref_slice %arg9[%c0_i32_155, %c2_i32_156, %c0_i32_161] : memref<2x8x128xf32, #tpu.memory_space<vmem>> -> memref<1x1x128xf32, #tpu.memory_space<vmem>>
      %180 = tpu.memref_squeeze %179 : memref<1x1x128xf32, #tpu.memory_space<vmem>> -> memref<128xf32, #tpu.memory_space<vmem>>
      %181 = tpu.memref_slice %arg10[%c0_i32_157, %c1_i32_158, %c2_i32_159] : memref<2x2x8x!tpu.dma_semaphore, #tpu.memory_space<semaphore_mem>> -> memref<1x1x1x!tpu.dma_semaphore, #tpu.memory_space<semaphore_mem>>
      %182 = tpu.memref_squeeze %181 : memref<1x1x1x!tpu.dma_semaphore, #tpu.memory_space<semaphore_mem>> -> memref<!tpu.dma_semaphore, #tpu.memory_space<semaphore_mem>>
      tpu.enqueue_dma source(%178 : memref<128xf32, #tpu.memory_space<any>>) target(%180 : memref<128xf32, #tpu.memory_space<vmem>>) target_semaphore(%182 : memref<!tpu.dma_semaphore, #tpu.memory_space<semaphore_mem>>)
      %c3 = arith.constant 3 : index
      %183 = memref.load %arg1[%c3] : memref<24xi32, #tpu.memory_space<smem>>
      %c3_162 = arith.constant 3 : index
      %184 = memref.load %arg2[%c3_162] : memref<24xi32, #tpu.memory_space<smem>>
      %c0_i32_163 = arith.constant 0 : i32
      %c3_i32_164 = arith.constant 3 : i32
      %c0_i32_165 = arith.constant 0 : i32
      %c0_i32_166 = arith.constant 0 : i32
      %c3_i32_167 = arith.constant 3 : i32
      %c0_i32_168 = arith.constant 0 : i32
      %185 = tpu.memref_slice %arg5[%183, %c0_i32_168] : memref<64x128xf32, #tpu.memory_space<any>> -> memref<1x128xf32, #tpu.memory_space<any>>
      %186 = tpu.memref_squeeze %185 : memref<1x128xf32, #tpu.memory_space<any>> -> memref<128xf32, #tpu.memory_space<any>>
      %c0_i32_169 = arith.constant 0 : i32
      %187 = tpu.memref_slice %arg8[%c0_i32_163, %c3_i32_164, %c0_i32_169] : memref<2x8x128xf32, #tpu.memory_space<vmem>> -> memref<1x1x128xf32, #tpu.memory_space<vmem>>
      %188 = tpu.memref_squeeze %187 : memref<1x1x128xf32, #tpu.memory_space<vmem>> -> memref<128xf32, #tpu.memory_space<vmem>>
      %189 = tpu.memref_slice %arg10[%c0_i32_165, %c0_i32_166, %c3_i32_167] : memref<2x2x8x!tpu.dma_semaphore, #tpu.memory_space<semaphore_mem>> -> memref<1x1x1x!tpu.dma_semaphore, #tpu.memory_space<semaphore_mem>>
      %190 = tpu.memref_squeeze %189 : memref<1x1x1x!tpu.dma_semaphore, #tpu.memory_space<semaphore_mem>> -> memref<!tpu.dma_semaphore, #tpu.memory_space<semaphore_mem>>
      tpu.enqueue_dma source(%186 : memref<128xf32, #tpu.memory_space<any>>) target(%188 : memref<128xf32, #tpu.memory_space<vmem>>) target_semaphore(%190 : memref<!tpu.dma_semaphore, #tpu.memory_space<semaphore_mem>>)
      %c0_i32_170 = arith.constant 0 : i32
      %c3_i32_171 = arith.constant 3 : i32
      %c0_i32_172 = arith.constant 0 : i32
      %c1_i32_173 = arith.constant 1 : i32
      %c3_i32_174 = arith.constant 3 : i32
      %c0_i32_175 = arith.constant 0 : i32
      %191 = tpu.memref_slice %arg6[%184, %c0_i32_175] : memref<64x128xf32, #tpu.memory_space<any>> -> memref<1x128xf32, #tpu.memory_space<any>>
      %192 = tpu.memref_squeeze %191 : memref<1x128xf32, #tpu.memory_space<any>> -> memref<128xf32, #tpu.memory_space<any>>
      %c0_i32_176 = arith.constant 0 : i32
      %193 = tpu.memref_slice %arg9[%c0_i32_170, %c3_i32_171, %c0_i32_176] : memref<2x8x128xf32, #tpu.memory_space<vmem>> -> memref<1x1x128xf32, #tpu.memory_space<vmem>>
      %194 = tpu.memref_squeeze %193 : memref<1x1x128xf32, #tpu.memory_space<vmem>> -> memref<128xf32, #tpu.memory_space<vmem>>
      %195 = tpu.memref_slice %arg10[%c0_i32_172, %c1_i32_173, %c3_i32_174] : memref<2x2x8x!tpu.dma_semaphore, #tpu.memory_space<semaphore_mem>> -> memref<1x1x1x!tpu.dma_semaphore, #tpu.memory_space<semaphore_mem>>
      %196 = tpu.memref_squeeze %195 : memref<1x1x1x!tpu.dma_semaphore, #tpu.memory_space<semaphore_mem>> -> memref<!tpu.dma_semaphore, #tpu.memory_space<semaphore_mem>>
      tpu.enqueue_dma source(%192 : memref<128xf32, #tpu.memory_space<any>>) target(%194 : memref<128xf32, #tpu.memory_space<vmem>>) target_semaphore(%196 : memref<!tpu.dma_semaphore, #tpu.memory_space<semaphore_mem>>)
      %c4 = arith.constant 4 : index
      %197 = memref.load %arg1[%c4] : memref<24xi32, #tpu.memory_space<smem>>
      %c4_177 = arith.constant 4 : index
      %198 = memref.load %arg2[%c4_177] : memref<24xi32, #tpu.memory_space<smem>>
      %c0_i32_178 = arith.constant 0 : i32
      %c4_i32_179 = arith.constant 4 : i32
      %c0_i32_180 = arith.constant 0 : i32
      %c0_i32_181 = arith.constant 0 : i32
      %c4_i32_182 = arith.constant 4 : i32
      %c0_i32_183 = arith.constant 0 : i32
      %199 = tpu.memref_slice %arg5[%197, %c0_i32_183] : memref<64x128xf32, #tpu.memory_space<any>> -> memref<1x128xf32, #tpu.memory_space<any>>
      %200 = tpu.memref_squeeze %199 : memref<1x128xf32, #tpu.memory_space<any>> -> memref<128xf32, #tpu.memory_space<any>>
      %c0_i32_184 = arith.constant 0 : i32
      %201 = tpu.memref_slice %arg8[%c0_i32_178, %c4_i32_179, %c0_i32_184] : memref<2x8x128xf32, #tpu.memory_space<vmem>> -> memref<1x1x128xf32, #tpu.memory_space<vmem>>
      %202 = tpu.memref_squeeze %201 : memref<1x1x128xf32, #tpu.memory_space<vmem>> -> memref<128xf32, #tpu.memory_space<vmem>>
      %203 = tpu.memref_slice %arg10[%c0_i32_180, %c0_i32_181, %c4_i32_182] : memref<2x2x8x!tpu.dma_semaphore, #tpu.memory_space<semaphore_mem>> -> memref<1x1x1x!tpu.dma_semaphore, #tpu.memory_space<semaphore_mem>>
      %204 = tpu.memref_squeeze %203 : memref<1x1x1x!tpu.dma_semaphore, #tpu.memory_space<semaphore_mem>> -> memref<!tpu.dma_semaphore, #tpu.memory_space<semaphore_mem>>
      tpu.enqueue_dma source(%200 : memref<128xf32, #tpu.memory_space<any>>) target(%202 : memref<128xf32, #tpu.memory_space<vmem>>) target_semaphore(%204 : memref<!tpu.dma_semaphore, #tpu.memory_space<semaphore_mem>>)
      %c0_i32_185 = arith.constant 0 : i32
      %c4_i32_186 = arith.constant 4 : i32
      %c0_i32_187 = arith.constant 0 : i32
      %c1_i32_188 = arith.constant 1 : i32
      %c4_i32_189 = arith.constant 4 : i32
      %c0_i32_190 = arith.constant 0 : i32
      %205 = tpu.memref_slice %arg6[%198, %c0_i32_190] : memref<64x128xf32, #tpu.memory_space<any>> -> memref<1x128xf32, #tpu.memory_space<any>>
      %206 = tpu.memref_squeeze %205 : memref<1x128xf32, #tpu.memory_space<any>> -> memref<128xf32, #tpu.memory_space<any>>
      %c0_i32_191 = arith.constant 0 : i32
      %207 = tpu.memref_slice %arg9[%c0_i32_185, %c4_i32_186, %c0_i32_191] : memref<2x8x128xf32, #tpu.memory_space<vmem>> -> memref<1x1x128xf32, #tpu.memory_space<vmem>>
      %208 = tpu.memref_squeeze %207 : memref<1x1x128xf32, #tpu.memory_space<vmem>> -> memref<128xf32, #tpu.memory_space<vmem>>
      %209 = tpu.memref_slice %arg10[%c0_i32_187, %c1_i32_188, %c4_i32_189] : memref<2x2x8x!tpu.dma_semaphore, #tpu.memory_space<semaphore_mem>> -> memref<1x1x1x!tpu.dma_semaphore, #tpu.memory_space<semaphore_mem>>
      %210 = tpu.memref_squeeze %209 : memref<1x1x1x!tpu.dma_semaphore, #tpu.memory_space<semaphore_mem>> -> memref<!tpu.dma_semaphore, #tpu.memory_space<semaphore_mem>>
      tpu.enqueue_dma source(%206 : memref<128xf32, #tpu.memory_space<any>>) target(%208 : memref<128xf32, #tpu.memory_space<vmem>>) target_semaphore(%210 : memref<!tpu.dma_semaphore, #tpu.memory_space<semaphore_mem>>)
      %c5 = arith.constant 5 : index
      %211 = memref.load %arg1[%c5] : memref<24xi32, #tpu.memory_space<smem>>
      %c5_192 = arith.constant 5 : index
      %212 = memref.load %arg2[%c5_192] : memref<24xi32, #tpu.memory_space<smem>>
      %c0_i32_193 = arith.constant 0 : i32
      %c5_i32_194 = arith.constant 5 : i32
      %c0_i32_195 = arith.constant 0 : i32
      %c0_i32_196 = arith.constant 0 : i32
      %c5_i32_197 = arith.constant 5 : i32
      %c0_i32_198 = arith.constant 0 : i32
      %213 = tpu.memref_slice %arg5[%211, %c0_i32_198] : memref<64x128xf32, #tpu.memory_space<any>> -> memref<1x128xf32, #tpu.memory_space<any>>
      %214 = tpu.memref_squeeze %213 : memref<1x128xf32, #tpu.memory_space<any>> -> memref<128xf32, #tpu.memory_space<any>>
      %c0_i32_199 = arith.constant 0 : i32
      %215 = tpu.memref_slice %arg8[%c0_i32_193, %c5_i32_194, %c0_i32_199] : memref<2x8x128xf32, #tpu.memory_space<vmem>> -> memref<1x1x128xf32, #tpu.memory_space<vmem>>
      %216 = tpu.memref_squeeze %215 : memref<1x1x128xf32, #tpu.memory_space<vmem>> -> memref<128xf32, #tpu.memory_space<vmem>>
      %217 = tpu.memref_slice %arg10[%c0_i32_195, %c0_i32_196, %c5_i32_197] : memref<2x2x8x!tpu.dma_semaphore, #tpu.memory_space<semaphore_mem>> -> memref<1x1x1x!tpu.dma_semaphore, #tpu.memory_space<semaphore_mem>>
      %218 = tpu.memref_squeeze %217 : memref<1x1x1x!tpu.dma_semaphore, #tpu.memory_space<semaphore_mem>> -> memref<!tpu.dma_semaphore, #tpu.memory_space<semaphore_mem>>
      tpu.enqueue_dma source(%214 : memref<128xf32, #tpu.memory_space<any>>) target(%216 : memref<128xf32, #tpu.memory_space<vmem>>) target_semaphore(%218 : memref<!tpu.dma_semaphore, #tpu.memory_space<semaphore_mem>>)
      %c0_i32_200 = arith.constant 0 : i32
      %c5_i32_201 = arith.constant 5 : i32
      %c0_i32_202 = arith.constant 0 : i32
      %c1_i32_203 = arith.constant 1 : i32
      %c5_i32_204 = arith.constant 5 : i32
      %c0_i32_205 = arith.constant 0 : i32
      %219 = tpu.memref_slice %arg6[%212, %c0_i32_205] : memref<64x128xf32, #tpu.memory_space<any>> -> memref<1x128xf32, #tpu.memory_space<any>>
      %220 = tpu.memref_squeeze %219 : memref<1x128xf32, #tpu.memory_space<any>> -> memref<128xf32, #tpu.memory_space<any>>
      %c0_i32_206 = arith.constant 0 : i32
      %221 = tpu.memref_slice %arg9[%c0_i32_200, %c5_i32_201, %c0_i32_206] : memref<2x8x128xf32, #tpu.memory_space<vmem>> -> memref<1x1x128xf32, #tpu.memory_space<vmem>>
      %222 = tpu.memref_squeeze %221 : memref<1x1x128xf32, #tpu.memory_space<vmem>> -> memref<128xf32, #tpu.memory_space<vmem>>
      %223 = tpu.memref_slice %arg10[%c0_i32_202, %c1_i32_203, %c5_i32_204] : memref<2x2x8x!tpu.dma_semaphore, #tpu.memory_space<semaphore_mem>> -> memref<1x1x1x!tpu.dma_semaphore, #tpu.memory_space<semaphore_mem>>
      %224 = tpu.memref_squeeze %223 : memref<1x1x1x!tpu.dma_semaphore, #tpu.memory_space<semaphore_mem>> -> memref<!tpu.dma_semaphore, #tpu.memory_space<semaphore_mem>>
      tpu.enqueue_dma source(%220 : memref<128xf32, #tpu.memory_space<any>>) target(%222 : memref<128xf32, #tpu.memory_space<vmem>>) target_semaphore(%224 : memref<!tpu.dma_semaphore, #tpu.memory_space<semaphore_mem>>)
      %c6 = arith.constant 6 : index
      %225 = memref.load %arg1[%c6] : memref<24xi32, #tpu.memory_space<smem>>
      %c6_207 = arith.constant 6 : index
      %226 = memref.load %arg2[%c6_207] : memref<24xi32, #tpu.memory_space<smem>>
      %c0_i32_208 = arith.constant 0 : i32
      %c6_i32_209 = arith.constant 6 : i32
      %c0_i32_210 = arith.constant 0 : i32
      %c0_i32_211 = arith.constant 0 : i32
      %c6_i32_212 = arith.constant 6 : i32
      %c0_i32_213 = arith.constant 0 : i32
      %227 = tpu.memref_slice %arg5[%225, %c0_i32_213] : memref<64x128xf32, #tpu.memory_space<any>> -> memref<1x128xf32, #tpu.memory_space<any>>
      %228 = tpu.memref_squeeze %227 : memref<1x128xf32, #tpu.memory_space<any>> -> memref<128xf32, #tpu.memory_space<any>>
      %c0_i32_214 = arith.constant 0 : i32
      %229 = tpu.memref_slice %arg8[%c0_i32_208, %c6_i32_209, %c0_i32_214] : memref<2x8x128xf32, #tpu.memory_space<vmem>> -> memref<1x1x128xf32, #tpu.memory_space<vmem>>
      %230 = tpu.memref_squeeze %229 : memref<1x1x128xf32, #tpu.memory_space<vmem>> -> memref<128xf32, #tpu.memory_space<vmem>>
      %231 = tpu.memref_slice %arg10[%c0_i32_210, %c0_i32_211, %c6_i32_212] : memref<2x2x8x!tpu.dma_semaphore, #tpu.memory_space<semaphore_mem>> -> memref<1x1x1x!tpu.dma_semaphore, #tpu.memory_space<semaphore_mem>>
      %232 = tpu.memref_squeeze %231 : memref<1x1x1x!tpu.dma_semaphore, #tpu.memory_space<semaphore_mem>> -> memref<!tpu.dma_semaphore, #tpu.memory_space<semaphore_mem>>
      tpu.enqueue_dma source(%228 : memref<128xf32, #tpu.memory_space<any>>) target(%230 : memref<128xf32, #tpu.memory_space<vmem>>) target_semaphore(%232 : memref<!tpu.dma_semaphore, #tpu.memory_space<semaphore_mem>>)
      %c0_i32_215 = arith.constant 0 : i32
      %c6_i32_216 = arith.constant 6 : i32
      %c0_i32_217 = arith.constant 0 : i32
      %c1_i32_218 = arith.constant 1 : i32
      %c6_i32_219 = arith.constant 6 : i32
      %c0_i32_220 = arith.constant 0 : i32
      %233 = tpu.memref_slice %arg6[%226, %c0_i32_220] : memref<64x128xf32, #tpu.memory_space<any>> -> memref<1x128xf32, #tpu.memory_space<any>>
      %234 = tpu.memref_squeeze %233 : memref<1x128xf32, #tpu.memory_space<any>> -> memref<128xf32, #tpu.memory_space<any>>
      %c0_i32_221 = arith.constant 0 : i32
      %235 = tpu.memref_slice %arg9[%c0_i32_215, %c6_i32_216, %c0_i32_221] : memref<2x8x128xf32, #tpu.memory_space<vmem>> -> memref<1x1x128xf32, #tpu.memory_space<vmem>>
      %236 = tpu.memref_squeeze %235 : memref<1x1x128xf32, #tpu.memory_space<vmem>> -> memref<128xf32, #tpu.memory_space<vmem>>
      %237 = tpu.memref_slice %arg10[%c0_i32_217, %c1_i32_218, %c6_i32_219] : memref<2x2x8x!tpu.dma_semaphore, #tpu.memory_space<semaphore_mem>> -> memref<1x1x1x!tpu.dma_semaphore, #tpu.memory_space<semaphore_mem>>
      %238 = tpu.memref_squeeze %237 : memref<1x1x1x!tpu.dma_semaphore, #tpu.memory_space<semaphore_mem>> -> memref<!tpu.dma_semaphore, #tpu.memory_space<semaphore_mem>>
      tpu.enqueue_dma source(%234 : memref<128xf32, #tpu.memory_space<any>>) target(%236 : memref<128xf32, #tpu.memory_space<vmem>>) target_semaphore(%238 : memref<!tpu.dma_semaphore, #tpu.memory_space<semaphore_mem>>)
      %c7 = arith.constant 7 : index
      %239 = memref.load %arg1[%c7] : memref<24xi32, #tpu.memory_space<smem>>
      %c7_222 = arith.constant 7 : index
      %240 = memref.load %arg2[%c7_222] : memref<24xi32, #tpu.memory_space<smem>>
      %c0_i32_223 = arith.constant 0 : i32
      %c7_i32_224 = arith.constant 7 : i32
      %c0_i32_225 = arith.constant 0 : i32
      %c0_i32_226 = arith.constant 0 : i32
      %c7_i32_227 = arith.constant 7 : i32
      %c0_i32_228 = arith.constant 0 : i32
      %241 = tpu.memref_slice %arg5[%239, %c0_i32_228] : memref<64x128xf32, #tpu.memory_space<any>> -> memref<1x128xf32, #tpu.memory_space<any>>
      %242 = tpu.memref_squeeze %241 : memref<1x128xf32, #tpu.memory_space<any>> -> memref<128xf32, #tpu.memory_space<any>>
      %c0_i32_229 = arith.constant 0 : i32
      %243 = tpu.memref_slice %arg8[%c0_i32_223, %c7_i32_224, %c0_i32_229] : memref<2x8x128xf32, #tpu.memory_space<vmem>> -> memref<1x1x128xf32, #tpu.memory_space<vmem>>
      %244 = tpu.memref_squeeze %243 : memref<1x1x128xf32, #tpu.memory_space<vmem>> -> memref<128xf32, #tpu.memory_space<vmem>>
      %245 = tpu.memref_slice %arg10[%c0_i32_225, %c0_i32_226, %c7_i32_227] : memref<2x2x8x!tpu.dma_semaphore, #tpu.memory_space<semaphore_mem>> -> memref<1x1x1x!tpu.dma_semaphore, #tpu.memory_space<semaphore_mem>>
      %246 = tpu.memref_squeeze %245 : memref<1x1x1x!tpu.dma_semaphore, #tpu.memory_space<semaphore_mem>> -> memref<!tpu.dma_semaphore, #tpu.memory_space<semaphore_mem>>
      tpu.enqueue_dma source(%242 : memref<128xf32, #tpu.memory_space<any>>) target(%244 : memref<128xf32, #tpu.memory_space<vmem>>) target_semaphore(%246 : memref<!tpu.dma_semaphore, #tpu.memory_space<semaphore_mem>>)
      %c0_i32_230 = arith.constant 0 : i32
      %c7_i32_231 = arith.constant 7 : i32
      %c0_i32_232 = arith.constant 0 : i32
      %c1_i32_233 = arith.constant 1 : i32
      %c7_i32_234 = arith.constant 7 : i32
      %c0_i32_235 = arith.constant 0 : i32
      %247 = tpu.memref_slice %arg6[%240, %c0_i32_235] : memref<64x128xf32, #tpu.memory_space<any>> -> memref<1x128xf32, #tpu.memory_space<any>>
      %248 = tpu.memref_squeeze %247 : memref<1x128xf32, #tpu.memory_space<any>> -> memref<128xf32, #tpu.memory_space<any>>
      %c0_i32_236 = arith.constant 0 : i32
      %249 = tpu.memref_slice %arg9[%c0_i32_230, %c7_i32_231, %c0_i32_236] : memref<2x8x128xf32, #tpu.memory_space<vmem>> -> memref<1x1x128xf32, #tpu.memory_space<vmem>>
      %250 = tpu.memref_squeeze %249 : memref<1x1x128xf32, #tpu.memory_space<vmem>> -> memref<128xf32, #tpu.memory_space<vmem>>
      %251 = tpu.memref_slice %arg10[%c0_i32_232, %c1_i32_233, %c7_i32_234] : memref<2x2x8x!tpu.dma_semaphore, #tpu.memory_space<semaphore_mem>> -> memref<1x1x1x!tpu.dma_semaphore, #tpu.memory_space<semaphore_mem>>
      %252 = tpu.memref_squeeze %251 : memref<1x1x1x!tpu.dma_semaphore, #tpu.memory_space<semaphore_mem>> -> memref<!tpu.dma_semaphore, #tpu.memory_space<semaphore_mem>>
      tpu.enqueue_dma source(%248 : memref<128xf32, #tpu.memory_space<any>>) target(%250 : memref<128xf32, #tpu.memory_space<vmem>>) target_semaphore(%252 : memref<!tpu.dma_semaphore, #tpu.memory_space<semaphore_mem>>)
    } else {
    }
    %c0_i32_5 = arith.constant 0 : i32
    %c0_i32_6 = arith.constant 0 : i32
    %c0_i32_7 = arith.constant 0 : i32
    %c0_i32_8 = arith.constant 0 : i32
    %c0_i32_9 = arith.constant 0 : i32
    %13 = tpu.memref_slice %arg5[%c0_i32_5, %c0_i32_9] : memref<64x128xf32, #tpu.memory_space<any>> -> memref<1x128xf32, #tpu.memory_space<any>>
    %14 = tpu.memref_squeeze %13 : memref<1x128xf32, #tpu.memory_space<any>> -> memref<128xf32, #tpu.memory_space<any>>
    %c0_i32_10 = arith.constant 0 : i32
    %15 = tpu.memref_slice %arg8[%9, %c0_i32_6, %c0_i32_10] : memref<2x8x128xf32, #tpu.memory_space<vmem>> -> memref<1x1x128xf32, #tpu.memory_space<vmem>>
    %16 = tpu.memref_squeeze %15 : memref<1x1x128xf32, #tpu.memory_space<vmem>> -> memref<128xf32, #tpu.memory_space<vmem>>
    %17 = tpu.memref_slice %arg10[%9, %c0_i32_7, %c0_i32_8] : memref<2x2x8x!tpu.dma_semaphore, #tpu.memory_space<semaphore_mem>> -> memref<1x1x1x!tpu.dma_semaphore, #tpu.memory_space<semaphore_mem>>
    %18 = tpu.memref_squeeze %17 : memref<1x1x1x!tpu.dma_semaphore, #tpu.memory_space<semaphore_mem>> -> memref<!tpu.dma_semaphore, #tpu.memory_space<semaphore_mem>>
    tpu.wait_dma2 semaphore(%18 : memref<!tpu.dma_semaphore, #tpu.memory_space<semaphore_mem>>) src(%14 : memref<128xf32, #tpu.memory_space<any>>) dst(%16 : memref<128xf32, #tpu.memory_space<vmem>>)
    %c0_i32_11 = arith.constant 0 : i32
    %c0_i32_12 = arith.constant 0 : i32
    %c1_i32_13 = arith.constant 1 : i32
    %c0_i32_14 = arith.constant 0 : i32
    %c0_i32_15 = arith.constant 0 : i32
    %19 = tpu.memref_slice %arg6[%c0_i32_11, %c0_i32_15] : memref<64x128xf32, #tpu.memory_space<any>> -> memref<1x128xf32, #tpu.memory_space<any>>
    %20 = tpu.memref_squeeze %19 : memref<1x128xf32, #tpu.memory_space<any>> -> memref<128xf32, #tpu.memory_space<any>>
    %c0_i32_16 = arith.constant 0 : i32
    %21 = tpu.memref_slice %arg9[%9, %c0_i32_12, %c0_i32_16] : memref<2x8x128xf32, #tpu.memory_space<vmem>> -> memref<1x1x128xf32, #tpu.memory_space<vmem>>
    %22 = tpu.memref_squeeze %21 : memref<1x1x128xf32, #tpu.memory_space<vmem>> -> memref<128xf32, #tpu.memory_space<vmem>>
    %23 = tpu.memref_slice %arg10[%9, %c1_i32_13, %c0_i32_14] : memref<2x2x8x!tpu.dma_semaphore, #tpu.memory_space<semaphore_mem>> -> memref<1x1x1x!tpu.dma_semaphore, #tpu.memory_space<semaphore_mem>>
    %24 = tpu.memref_squeeze %23 : memref<1x1x1x!tpu.dma_semaphore, #tpu.memory_space<semaphore_mem>> -> memref<!tpu.dma_semaphore, #tpu.memory_space<semaphore_mem>>
    tpu.wait_dma2 semaphore(%24 : memref<!tpu.dma_semaphore, #tpu.memory_space<semaphore_mem>>) src(%20 : memref<128xf32, #tpu.memory_space<any>>) dst(%22 : memref<128xf32, #tpu.memory_space<vmem>>)
    %c0_i32_17 = arith.constant 0 : i32
    %c1_i32_18 = arith.constant 1 : i32
    %c0_i32_19 = arith.constant 0 : i32
    %c1_i32_20 = arith.constant 1 : i32
    %c0_i32_21 = arith.constant 0 : i32
    %25 = tpu.memref_slice %arg5[%c0_i32_17, %c0_i32_21] : memref<64x128xf32, #tpu.memory_space<any>> -> memref<1x128xf32, #tpu.memory_space<any>>
    %26 = tpu.memref_squeeze %25 : memref<1x128xf32, #tpu.memory_space<any>> -> memref<128xf32, #tpu.memory_space<any>>
    %c0_i32_22 = arith.constant 0 : i32
    %27 = tpu.memref_slice %arg8[%9, %c1_i32_18, %c0_i32_22] : memref<2x8x128xf32, #tpu.memory_space<vmem>> -> memref<1x1x128xf32, #tpu.memory_space<vmem>>
    %28 = tpu.memref_squeeze %27 : memref<1x1x128xf32, #tpu.memory_space<vmem>> -> memref<128xf32, #tpu.memory_space<vmem>>
    %29 = tpu.memref_slice %arg10[%9, %c0_i32_19, %c1_i32_20] : memref<2x2x8x!tpu.dma_semaphore, #tpu.memory_space<semaphore_mem>> -> memref<1x1x1x!tpu.dma_semaphore, #tpu.memory_space<semaphore_mem>>
    %30 = tpu.memref_squeeze %29 : memref<1x1x1x!tpu.dma_semaphore, #tpu.memory_space<semaphore_mem>> -> memref<!tpu.dma_semaphore, #tpu.memory_space<semaphore_mem>>
    tpu.wait_dma2 semaphore(%30 : memref<!tpu.dma_semaphore, #tpu.memory_space<semaphore_mem>>) src(%26 : memref<128xf32, #tpu.memory_space<any>>) dst(%28 : memref<128xf32, #tpu.memory_space<vmem>>)
    %c0_i32_23 = arith.constant 0 : i32
    %c1_i32_24 = arith.constant 1 : i32
    %c1_i32_25 = arith.constant 1 : i32
    %c1_i32_26 = arith.constant 1 : i32
    %c0_i32_27 = arith.constant 0 : i32
    %31 = tpu.memref_slice %arg6[%c0_i32_23, %c0_i32_27] : memref<64x128xf32, #tpu.memory_space<any>> -> memref<1x128xf32, #tpu.memory_space<any>>
    %32 = tpu.memref_squeeze %31 : memref<1x128xf32, #tpu.memory_space<any>> -> memref<128xf32, #tpu.memory_space<any>>
    %c0_i32_28 = arith.constant 0 : i32
    %33 = tpu.memref_slice %arg9[%9, %c1_i32_24, %c0_i32_28] : memref<2x8x128xf32, #tpu.memory_space<vmem>> -> memref<1x1x128xf32, #tpu.memory_space<vmem>>
    %34 = tpu.memref_squeeze %33 : memref<1x1x128xf32, #tpu.memory_space<vmem>> -> memref<128xf32, #tpu.memory_space<vmem>>
    %35 = tpu.memref_slice %arg10[%9, %c1_i32_25, %c1_i32_26] : memref<2x2x8x!tpu.dma_semaphore, #tpu.memory_space<semaphore_mem>> -> memref<1x1x1x!tpu.dma_semaphore, #tpu.memory_space<semaphore_mem>>
    %36 = tpu.memref_squeeze %35 : memref<1x1x1x!tpu.dma_semaphore, #tpu.memory_space<semaphore_mem>> -> memref<!tpu.dma_semaphore, #tpu.memory_space<semaphore_mem>>
    tpu.wait_dma2 semaphore(%36 : memref<!tpu.dma_semaphore, #tpu.memory_space<semaphore_mem>>) src(%32 : memref<128xf32, #tpu.memory_space<any>>) dst(%34 : memref<128xf32, #tpu.memory_space<vmem>>)
    %c0_i32_29 = arith.constant 0 : i32
    %c2_i32_30 = arith.constant 2 : i32
    %c0_i32_31 = arith.constant 0 : i32
    %c2_i32_32 = arith.constant 2 : i32
    %c0_i32_33 = arith.constant 0 : i32
    %37 = tpu.memref_slice %arg5[%c0_i32_29, %c0_i32_33] : memref<64x128xf32, #tpu.memory_space<any>> -> memref<1x128xf32, #tpu.memory_space<any>>
    %38 = tpu.memref_squeeze %37 : memref<1x128xf32, #tpu.memory_space<any>> -> memref<128xf32, #tpu.memory_space<any>>
    %c0_i32_34 = arith.constant 0 : i32
    %39 = tpu.memref_slice %arg8[%9, %c2_i32_30, %c0_i32_34] : memref<2x8x128xf32, #tpu.memory_space<vmem>> -> memref<1x1x128xf32, #tpu.memory_space<vmem>>
    %40 = tpu.memref_squeeze %39 : memref<1x1x128xf32, #tpu.memory_space<vmem>> -> memref<128xf32, #tpu.memory_space<vmem>>
    %41 = tpu.memref_slice %arg10[%9, %c0_i32_31, %c2_i32_32] : memref<2x2x8x!tpu.dma_semaphore, #tpu.memory_space<semaphore_mem>> -> memref<1x1x1x!tpu.dma_semaphore, #tpu.memory_space<semaphore_mem>>
    %42 = tpu.memref_squeeze %41 : memref<1x1x1x!tpu.dma_semaphore, #tpu.memory_space<semaphore_mem>> -> memref<!tpu.dma_semaphore, #tpu.memory_space<semaphore_mem>>
    tpu.wait_dma2 semaphore(%42 : memref<!tpu.dma_semaphore, #tpu.memory_space<semaphore_mem>>) src(%38 : memref<128xf32, #tpu.memory_space<any>>) dst(%40 : memref<128xf32, #tpu.memory_space<vmem>>)
    %c0_i32_35 = arith.constant 0 : i32
    %c2_i32_36 = arith.constant 2 : i32
    %c1_i32_37 = arith.constant 1 : i32
    %c2_i32_38 = arith.constant 2 : i32
    %c0_i32_39 = arith.constant 0 : i32
    %43 = tpu.memref_slice %arg6[%c0_i32_35, %c0_i32_39] : memref<64x128xf32, #tpu.memory_space<any>> -> memref<1x128xf32, #tpu.memory_space<any>>
    %44 = tpu.memref_squeeze %43 : memref<1x128xf32, #tpu.memory_space<any>> -> memref<128xf32, #tpu.memory_space<any>>
    %c0_i32_40 = arith.constant 0 : i32
    %45 = tpu.memref_slice %arg9[%9, %c2_i32_36, %c0_i32_40] : memref<2x8x128xf32, #tpu.memory_space<vmem>> -> memref<1x1x128xf32, #tpu.memory_space<vmem>>
    %46 = tpu.memref_squeeze %45 : memref<1x1x128xf32, #tpu.memory_space<vmem>> -> memref<128xf32, #tpu.memory_space<vmem>>
    %47 = tpu.memref_slice %arg10[%9, %c1_i32_37, %c2_i32_38] : memref<2x2x8x!tpu.dma_semaphore, #tpu.memory_space<semaphore_mem>> -> memref<1x1x1x!tpu.dma_semaphore, #tpu.memory_space<semaphore_mem>>
    %48 = tpu.memref_squeeze %47 : memref<1x1x1x!tpu.dma_semaphore, #tpu.memory_space<semaphore_mem>> -> memref<!tpu.dma_semaphore, #tpu.memory_space<semaphore_mem>>
    tpu.wait_dma2 semaphore(%48 : memref<!tpu.dma_semaphore, #tpu.memory_space<semaphore_mem>>) src(%44 : memref<128xf32, #tpu.memory_space<any>>) dst(%46 : memref<128xf32, #tpu.memory_space<vmem>>)
    %c0_i32_41 = arith.constant 0 : i32
    %c3_i32 = arith.constant 3 : i32
    %c0_i32_42 = arith.constant 0 : i32
    %c3_i32_43 = arith.constant 3 : i32
    %c0_i32_44 = arith.constant 0 : i32
    %49 = tpu.memref_slice %arg5[%c0_i32_41, %c0_i32_44] : memref<64x128xf32, #tpu.memory_space<any>> -> memref<1x128xf32, #tpu.memory_space<any>>
    %50 = tpu.memref_squeeze %49 : memref<1x128xf32, #tpu.memory_space<any>> -> memref<128xf32, #tpu.memory_space<any>>
    %c0_i32_45 = arith.constant 0 : i32
    %51 = tpu.memref_slice %arg8[%9, %c3_i32, %c0_i32_45] : memref<2x8x128xf32, #tpu.memory_space<vmem>> -> memref<1x1x128xf32, #tpu.memory_space<vmem>>
    %52 = tpu.memref_squeeze %51 : memref<1x1x128xf32, #tpu.memory_space<vmem>> -> memref<128xf32, #tpu.memory_space<vmem>>
    %53 = tpu.memref_slice %arg10[%9, %c0_i32_42, %c3_i32_43] : memref<2x2x8x!tpu.dma_semaphore, #tpu.memory_space<semaphore_mem>> -> memref<1x1x1x!tpu.dma_semaphore, #tpu.memory_space<semaphore_mem>>
    %54 = tpu.memref_squeeze %53 : memref<1x1x1x!tpu.dma_semaphore, #tpu.memory_space<semaphore_mem>> -> memref<!tpu.dma_semaphore, #tpu.memory_space<semaphore_mem>>
    tpu.wait_dma2 semaphore(%54 : memref<!tpu.dma_semaphore, #tpu.memory_space<semaphore_mem>>) src(%50 : memref<128xf32, #tpu.memory_space<any>>) dst(%52 : memref<128xf32, #tpu.memory_space<vmem>>)
    %c0_i32_46 = arith.constant 0 : i32
    %c3_i32_47 = arith.constant 3 : i32
    %c1_i32_48 = arith.constant 1 : i32
    %c3_i32_49 = arith.constant 3 : i32
    %c0_i32_50 = arith.constant 0 : i32
    %55 = tpu.memref_slice %arg6[%c0_i32_46, %c0_i32_50] : memref<64x128xf32, #tpu.memory_space<any>> -> memref<1x128xf32, #tpu.memory_space<any>>
    %56 = tpu.memref_squeeze %55 : memref<1x128xf32, #tpu.memory_space<any>> -> memref<128xf32, #tpu.memory_space<any>>
    %c0_i32_51 = arith.constant 0 : i32
    %57 = tpu.memref_slice %arg9[%9, %c3_i32_47, %c0_i32_51] : memref<2x8x128xf32, #tpu.memory_space<vmem>> -> memref<1x1x128xf32, #tpu.memory_space<vmem>>
    %58 = tpu.memref_squeeze %57 : memref<1x1x128xf32, #tpu.memory_space<vmem>> -> memref<128xf32, #tpu.memory_space<vmem>>
    %59 = tpu.memref_slice %arg10[%9, %c1_i32_48, %c3_i32_49] : memref<2x2x8x!tpu.dma_semaphore, #tpu.memory_space<semaphore_mem>> -> memref<1x1x1x!tpu.dma_semaphore, #tpu.memory_space<semaphore_mem>>
    %60 = tpu.memref_squeeze %59 : memref<1x1x1x!tpu.dma_semaphore, #tpu.memory_space<semaphore_mem>> -> memref<!tpu.dma_semaphore, #tpu.memory_space<semaphore_mem>>
    tpu.wait_dma2 semaphore(%60 : memref<!tpu.dma_semaphore, #tpu.memory_space<semaphore_mem>>) src(%56 : memref<128xf32, #tpu.memory_space<any>>) dst(%58 : memref<128xf32, #tpu.memory_space<vmem>>)
    %c0_i32_52 = arith.constant 0 : i32
    %c4_i32 = arith.constant 4 : i32
    %c0_i32_53 = arith.constant 0 : i32
    %c4_i32_54 = arith.constant 4 : i32
    %c0_i32_55 = arith.constant 0 : i32
    %61 = tpu.memref_slice %arg5[%c0_i32_52, %c0_i32_55] : memref<64x128xf32, #tpu.memory_space<any>> -> memref<1x128xf32, #tpu.memory_space<any>>
    %62 = tpu.memref_squeeze %61 : memref<1x128xf32, #tpu.memory_space<any>> -> memref<128xf32, #tpu.memory_space<any>>
    %c0_i32_56 = arith.constant 0 : i32
    %63 = tpu.memref_slice %arg8[%9, %c4_i32, %c0_i32_56] : memref<2x8x128xf32, #tpu.memory_space<vmem>> -> memref<1x1x128xf32, #tpu.memory_space<vmem>>
    %64 = tpu.memref_squeeze %63 : memref<1x1x128xf32, #tpu.memory_space<vmem>> -> memref<128xf32, #tpu.memory_space<vmem>>
    %65 = tpu.memref_slice %arg10[%9, %c0_i32_53, %c4_i32_54] : memref<2x2x8x!tpu.dma_semaphore, #tpu.memory_space<semaphore_mem>> -> memref<1x1x1x!tpu.dma_semaphore, #tpu.memory_space<semaphore_mem>>
    %66 = tpu.memref_squeeze %65 : memref<1x1x1x!tpu.dma_semaphore, #tpu.memory_space<semaphore_mem>> -> memref<!tpu.dma_semaphore, #tpu.memory_space<semaphore_mem>>
    tpu.wait_dma2 semaphore(%66 : memref<!tpu.dma_semaphore, #tpu.memory_space<semaphore_mem>>) src(%62 : memref<128xf32, #tpu.memory_space<any>>) dst(%64 : memref<128xf32, #tpu.memory_space<vmem>>)
    %c0_i32_57 = arith.constant 0 : i32
    %c4_i32_58 = arith.constant 4 : i32
    %c1_i32_59 = arith.constant 1 : i32
    %c4_i32_60 = arith.constant 4 : i32
    %c0_i32_61 = arith.constant 0 : i32
    %67 = tpu.memref_slice %arg6[%c0_i32_57, %c0_i32_61] : memref<64x128xf32, #tpu.memory_space<any>> -> memref<1x128xf32, #tpu.memory_space<any>>
    %68 = tpu.memref_squeeze %67 : memref<1x128xf32, #tpu.memory_space<any>> -> memref<128xf32, #tpu.memory_space<any>>
    %c0_i32_62 = arith.constant 0 : i32
    %69 = tpu.memref_slice %arg9[%9, %c4_i32_58, %c0_i32_62] : memref<2x8x128xf32, #tpu.memory_space<vmem>> -> memref<1x1x128xf32, #tpu.memory_space<vmem>>
    %70 = tpu.memref_squeeze %69 : memref<1x1x128xf32, #tpu.memory_space<vmem>> -> memref<128xf32, #tpu.memory_space<vmem>>
    %71 = tpu.memref_slice %arg10[%9, %c1_i32_59, %c4_i32_60] : memref<2x2x8x!tpu.dma_semaphore, #tpu.memory_space<semaphore_mem>> -> memref<1x1x1x!tpu.dma_semaphore, #tpu.memory_space<semaphore_mem>>
    %72 = tpu.memref_squeeze %71 : memref<1x1x1x!tpu.dma_semaphore, #tpu.memory_space<semaphore_mem>> -> memref<!tpu.dma_semaphore, #tpu.memory_space<semaphore_mem>>
    tpu.wait_dma2 semaphore(%72 : memref<!tpu.dma_semaphore, #tpu.memory_space<semaphore_mem>>) src(%68 : memref<128xf32, #tpu.memory_space<any>>) dst(%70 : memref<128xf32, #tpu.memory_space<vmem>>)
    %c0_i32_63 = arith.constant 0 : i32
    %c5_i32 = arith.constant 5 : i32
    %c0_i32_64 = arith.constant 0 : i32
    %c5_i32_65 = arith.constant 5 : i32
    %c0_i32_66 = arith.constant 0 : i32
    %73 = tpu.memref_slice %arg5[%c0_i32_63, %c0_i32_66] : memref<64x128xf32, #tpu.memory_space<any>> -> memref<1x128xf32, #tpu.memory_space<any>>
    %74 = tpu.memref_squeeze %73 : memref<1x128xf32, #tpu.memory_space<any>> -> memref<128xf32, #tpu.memory_space<any>>
    %c0_i32_67 = arith.constant 0 : i32
    %75 = tpu.memref_slice %arg8[%9, %c5_i32, %c0_i32_67] : memref<2x8x128xf32, #tpu.memory_space<vmem>> -> memref<1x1x128xf32, #tpu.memory_space<vmem>>
    %76 = tpu.memref_squeeze %75 : memref<1x1x128xf32, #tpu.memory_space<vmem>> -> memref<128xf32, #tpu.memory_space<vmem>>
    %77 = tpu.memref_slice %arg10[%9, %c0_i32_64, %c5_i32_65] : memref<2x2x8x!tpu.dma_semaphore, #tpu.memory_space<semaphore_mem>> -> memref<1x1x1x!tpu.dma_semaphore, #tpu.memory_space<semaphore_mem>>
    %78 = tpu.memref_squeeze %77 : memref<1x1x1x!tpu.dma_semaphore, #tpu.memory_space<semaphore_mem>> -> memref<!tpu.dma_semaphore, #tpu.memory_space<semaphore_mem>>
    tpu.wait_dma2 semaphore(%78 : memref<!tpu.dma_semaphore, #tpu.memory_space<semaphore_mem>>) src(%74 : memref<128xf32, #tpu.memory_space<any>>) dst(%76 : memref<128xf32, #tpu.memory_space<vmem>>)
    %c0_i32_68 = arith.constant 0 : i32
    %c5_i32_69 = arith.constant 5 : i32
    %c1_i32_70 = arith.constant 1 : i32
    %c5_i32_71 = arith.constant 5 : i32
    %c0_i32_72 = arith.constant 0 : i32
    %79 = tpu.memref_slice %arg6[%c0_i32_68, %c0_i32_72] : memref<64x128xf32, #tpu.memory_space<any>> -> memref<1x128xf32, #tpu.memory_space<any>>
    %80 = tpu.memref_squeeze %79 : memref<1x128xf32, #tpu.memory_space<any>> -> memref<128xf32, #tpu.memory_space<any>>
    %c0_i32_73 = arith.constant 0 : i32
    %81 = tpu.memref_slice %arg9[%9, %c5_i32_69, %c0_i32_73] : memref<2x8x128xf32, #tpu.memory_space<vmem>> -> memref<1x1x128xf32, #tpu.memory_space<vmem>>
    %82 = tpu.memref_squeeze %81 : memref<1x1x128xf32, #tpu.memory_space<vmem>> -> memref<128xf32, #tpu.memory_space<vmem>>
    %83 = tpu.memref_slice %arg10[%9, %c1_i32_70, %c5_i32_71] : memref<2x2x8x!tpu.dma_semaphore, #tpu.memory_space<semaphore_mem>> -> memref<1x1x1x!tpu.dma_semaphore, #tpu.memory_space<semaphore_mem>>
    %84 = tpu.memref_squeeze %83 : memref<1x1x1x!tpu.dma_semaphore, #tpu.memory_space<semaphore_mem>> -> memref<!tpu.dma_semaphore, #tpu.memory_space<semaphore_mem>>
    tpu.wait_dma2 semaphore(%84 : memref<!tpu.dma_semaphore, #tpu.memory_space<semaphore_mem>>) src(%80 : memref<128xf32, #tpu.memory_space<any>>) dst(%82 : memref<128xf32, #tpu.memory_space<vmem>>)
    %c0_i32_74 = arith.constant 0 : i32
    %c6_i32 = arith.constant 6 : i32
    %c0_i32_75 = arith.constant 0 : i32
    %c6_i32_76 = arith.constant 6 : i32
    %c0_i32_77 = arith.constant 0 : i32
    %85 = tpu.memref_slice %arg5[%c0_i32_74, %c0_i32_77] : memref<64x128xf32, #tpu.memory_space<any>> -> memref<1x128xf32, #tpu.memory_space<any>>
    %86 = tpu.memref_squeeze %85 : memref<1x128xf32, #tpu.memory_space<any>> -> memref<128xf32, #tpu.memory_space<any>>
    %c0_i32_78 = arith.constant 0 : i32
    %87 = tpu.memref_slice %arg8[%9, %c6_i32, %c0_i32_78] : memref<2x8x128xf32, #tpu.memory_space<vmem>> -> memref<1x1x128xf32, #tpu.memory_space<vmem>>
    %88 = tpu.memref_squeeze %87 : memref<1x1x128xf32, #tpu.memory_space<vmem>> -> memref<128xf32, #tpu.memory_space<vmem>>
    %89 = tpu.memref_slice %arg10[%9, %c0_i32_75, %c6_i32_76] : memref<2x2x8x!tpu.dma_semaphore, #tpu.memory_space<semaphore_mem>> -> memref<1x1x1x!tpu.dma_semaphore, #tpu.memory_space<semaphore_mem>>
    %90 = tpu.memref_squeeze %89 : memref<1x1x1x!tpu.dma_semaphore, #tpu.memory_space<semaphore_mem>> -> memref<!tpu.dma_semaphore, #tpu.memory_space<semaphore_mem>>
    tpu.wait_dma2 semaphore(%90 : memref<!tpu.dma_semaphore, #tpu.memory_space<semaphore_mem>>) src(%86 : memref<128xf32, #tpu.memory_space<any>>) dst(%88 : memref<128xf32, #tpu.memory_space<vmem>>)
    %c0_i32_79 = arith.constant 0 : i32
    %c6_i32_80 = arith.constant 6 : i32
    %c1_i32_81 = arith.constant 1 : i32
    %c6_i32_82 = arith.constant 6 : i32
    %c0_i32_83 = arith.constant 0 : i32
    %91 = tpu.memref_slice %arg6[%c0_i32_79, %c0_i32_83] : memref<64x128xf32, #tpu.memory_space<any>> -> memref<1x128xf32, #tpu.memory_space<any>>
    %92 = tpu.memref_squeeze %91 : memref<1x128xf32, #tpu.memory_space<any>> -> memref<128xf32, #tpu.memory_space<any>>
    %c0_i32_84 = arith.constant 0 : i32
    %93 = tpu.memref_slice %arg9[%9, %c6_i32_80, %c0_i32_84] : memref<2x8x128xf32, #tpu.memory_space<vmem>> -> memref<1x1x128xf32, #tpu.memory_space<vmem>>
    %94 = tpu.memref_squeeze %93 : memref<1x1x128xf32, #tpu.memory_space<vmem>> -> memref<128xf32, #tpu.memory_space<vmem>>
    %95 = tpu.memref_slice %arg10[%9, %c1_i32_81, %c6_i32_82] : memref<2x2x8x!tpu.dma_semaphore, #tpu.memory_space<semaphore_mem>> -> memref<1x1x1x!tpu.dma_semaphore, #tpu.memory_space<semaphore_mem>>
    %96 = tpu.memref_squeeze %95 : memref<1x1x1x!tpu.dma_semaphore, #tpu.memory_space<semaphore_mem>> -> memref<!tpu.dma_semaphore, #tpu.memory_space<semaphore_mem>>
    tpu.wait_dma2 semaphore(%96 : memref<!tpu.dma_semaphore, #tpu.memory_space<semaphore_mem>>) src(%92 : memref<128xf32, #tpu.memory_space<any>>) dst(%94 : memref<128xf32, #tpu.memory_space<vmem>>)
    %c0_i32_85 = arith.constant 0 : i32
    %c7_i32 = arith.constant 7 : i32
    %c0_i32_86 = arith.constant 0 : i32
    %c7_i32_87 = arith.constant 7 : i32
    %c0_i32_88 = arith.constant 0 : i32
    %97 = tpu.memref_slice %arg5[%c0_i32_85, %c0_i32_88] : memref<64x128xf32, #tpu.memory_space<any>> -> memref<1x128xf32, #tpu.memory_space<any>>
    %98 = tpu.memref_squeeze %97 : memref<1x128xf32, #tpu.memory_space<any>> -> memref<128xf32, #tpu.memory_space<any>>
    %c0_i32_89 = arith.constant 0 : i32
    %99 = tpu.memref_slice %arg8[%9, %c7_i32, %c0_i32_89] : memref<2x8x128xf32, #tpu.memory_space<vmem>> -> memref<1x1x128xf32, #tpu.memory_space<vmem>>
    %100 = tpu.memref_squeeze %99 : memref<1x1x128xf32, #tpu.memory_space<vmem>> -> memref<128xf32, #tpu.memory_space<vmem>>
    %101 = tpu.memref_slice %arg10[%9, %c0_i32_86, %c7_i32_87] : memref<2x2x8x!tpu.dma_semaphore, #tpu.memory_space<semaphore_mem>> -> memref<1x1x1x!tpu.dma_semaphore, #tpu.memory_space<semaphore_mem>>
    %102 = tpu.memref_squeeze %101 : memref<1x1x1x!tpu.dma_semaphore, #tpu.memory_space<semaphore_mem>> -> memref<!tpu.dma_semaphore, #tpu.memory_space<semaphore_mem>>
    tpu.wait_dma2 semaphore(%102 : memref<!tpu.dma_semaphore, #tpu.memory_space<semaphore_mem>>) src(%98 : memref<128xf32, #tpu.memory_space<any>>) dst(%100 : memref<128xf32, #tpu.memory_space<vmem>>)
    %c0_i32_90 = arith.constant 0 : i32
    %c7_i32_91 = arith.constant 7 : i32
    %c1_i32_92 = arith.constant 1 : i32
    %c7_i32_93 = arith.constant 7 : i32
    %c0_i32_94 = arith.constant 0 : i32
    %103 = tpu.memref_slice %arg6[%c0_i32_90, %c0_i32_94] : memref<64x128xf32, #tpu.memory_space<any>> -> memref<1x128xf32, #tpu.memory_space<any>>
    %104 = tpu.memref_squeeze %103 : memref<1x128xf32, #tpu.memory_space<any>> -> memref<128xf32, #tpu.memory_space<any>>
    %c0_i32_95 = arith.constant 0 : i32
    %105 = tpu.memref_slice %arg9[%9, %c7_i32_91, %c0_i32_95] : memref<2x8x128xf32, #tpu.memory_space<vmem>> -> memref<1x1x128xf32, #tpu.memory_space<vmem>>
    %106 = tpu.memref_squeeze %105 : memref<1x1x128xf32, #tpu.memory_space<vmem>> -> memref<128xf32, #tpu.memory_space<vmem>>
    %107 = tpu.memref_slice %arg10[%9, %c1_i32_92, %c7_i32_93] : memref<2x2x8x!tpu.dma_semaphore, #tpu.memory_space<semaphore_mem>> -> memref<1x1x1x!tpu.dma_semaphore, #tpu.memory_space<semaphore_mem>>
    %108 = tpu.memref_squeeze %107 : memref<1x1x1x!tpu.dma_semaphore, #tpu.memory_space<semaphore_mem>> -> memref<!tpu.dma_semaphore, #tpu.memory_space<semaphore_mem>>
    tpu.wait_dma2 semaphore(%108 : memref<!tpu.dma_semaphore, #tpu.memory_space<semaphore_mem>>) src(%104 : memref<128xf32, #tpu.memory_space<any>>) dst(%106 : memref<128xf32, #tpu.memory_space<vmem>>)
    %c1_i32_96 = arith.constant 1 : i32
    %109 = arith.addi %arg0, %c1_i32_96 : i32
    %c3_i32_97 = arith.constant 3 : i32
    %110 = arith.cmpi slt, %109, %c3_i32_97 : i32
    %111 = arith.extui %110 : i1 to i32
    %c0_i32_98 = arith.constant 0 : i32
    %112 = arith.cmpi ne, %111, %c0_i32_98 : i32
    scf.if %112 {
      %c1_i32_113 = arith.constant 1 : i32
      %139 = arith.addi %arg0, %c1_i32_113 : i32
      %c1_i32_114 = arith.constant 1 : i32
      %140 = arith.subi %c1_i32_114, %9 : i32
      %c8_i32 = arith.constant 8 : i32
      %141 = arith.muli %139, %c8_i32 : i32
      %c0_i32_115 = arith.constant 0 : i32
      %142 = arith.addi %141, %c0_i32_115 : i32
      %143 = arith.index_cast %142 : i32 to index
      %144 = memref.load %arg1[%143] : memref<24xi32, #tpu.memory_space<smem>>
      %c0_i32_116 = arith.constant 0 : i32
      %145 = arith.addi %141, %c0_i32_116 : i32
      %146 = arith.index_cast %145 : i32 to index
      %147 = memref.load %arg2[%146] : memref<24xi32, #tpu.memory_space<smem>>
      %c0_i32_117 = arith.constant 0 : i32
      %c0_i32_118 = arith.constant 0 : i32
      %c0_i32_119 = arith.constant 0 : i32
      %c0_i32_120 = arith.constant 0 : i32
      %148 = tpu.memref_slice %arg5[%144, %c0_i32_120] : memref<64x128xf32, #tpu.memory_space<any>> -> memref<1x128xf32, #tpu.memory_space<any>>
      %149 = tpu.memref_squeeze %148 : memref<1x128xf32, #tpu.memory_space<any>> -> memref<128xf32, #tpu.memory_space<any>>
      %c0_i32_121 = arith.constant 0 : i32
      %150 = tpu.memref_slice %arg8[%140, %c0_i32_117, %c0_i32_121] : memref<2x8x128xf32, #tpu.memory_space<vmem>> -> memref<1x1x128xf32, #tpu.memory_space<vmem>>
      %151 = tpu.memref_squeeze %150 : memref<1x1x128xf32, #tpu.memory_space<vmem>> -> memref<128xf32, #tpu.memory_space<vmem>>
      %152 = tpu.memref_slice %arg10[%140, %c0_i32_118, %c0_i32_119] : memref<2x2x8x!tpu.dma_semaphore, #tpu.memory_space<semaphore_mem>> -> memref<1x1x1x!tpu.dma_semaphore, #tpu.memory_space<semaphore_mem>>
      %153 = tpu.memref_squeeze %152 : memref<1x1x1x!tpu.dma_semaphore, #tpu.memory_space<semaphore_mem>> -> memref<!tpu.dma_semaphore, #tpu.memory_space<semaphore_mem>>
      tpu.enqueue_dma source(%149 : memref<128xf32, #tpu.memory_space<any>>) target(%151 : memref<128xf32, #tpu.memory_space<vmem>>) target_semaphore(%153 : memref<!tpu.dma_semaphore, #tpu.memory_space<semaphore_mem>>)
      %c0_i32_122 = arith.constant 0 : i32
      %c1_i32_123 = arith.constant 1 : i32
      %c0_i32_124 = arith.constant 0 : i32
      %c0_i32_125 = arith.constant 0 : i32
      %154 = tpu.memref_slice %arg6[%147, %c0_i32_125] : memref<64x128xf32, #tpu.memory_space<any>> -> memref<1x128xf32, #tpu.memory_space<any>>
      %155 = tpu.memref_squeeze %154 : memref<1x128xf32, #tpu.memory_space<any>> -> memref<128xf32, #tpu.memory_space<any>>
      %c0_i32_126 = arith.constant 0 : i32
      %156 = tpu.memref_slice %arg9[%140, %c0_i32_122, %c0_i32_126] : memref<2x8x128xf32, #tpu.memory_space<vmem>> -> memref<1x1x128xf32, #tpu.memory_space<vmem>>
      %157 = tpu.memref_squeeze %156 : memref<1x1x128xf32, #tpu.memory_space<vmem>> -> memref<128xf32, #tpu.memory_space<vmem>>
      %158 = tpu.memref_slice %arg10[%140, %c1_i32_123, %c0_i32_124] : memref<2x2x8x!tpu.dma_semaphore, #tpu.memory_space<semaphore_mem>> -> memref<1x1x1x!tpu.dma_semaphore, #tpu.memory_space<semaphore_mem>>
      %159 = tpu.memref_squeeze %158 : memref<1x1x1x!tpu.dma_semaphore, #tpu.memory_space<semaphore_mem>> -> memref<!tpu.dma_semaphore, #tpu.memory_space<semaphore_mem>>
      tpu.enqueue_dma source(%155 : memref<128xf32, #tpu.memory_space<any>>) target(%157 : memref<128xf32, #tpu.memory_space<vmem>>) target_semaphore(%159 : memref<!tpu.dma_semaphore, #tpu.memory_space<semaphore_mem>>)
      %c1_i32_127 = arith.constant 1 : i32
      %160 = arith.addi %141, %c1_i32_127 : i32
      %161 = arith.index_cast %160 : i32 to index
      %162 = memref.load %arg1[%161] : memref<24xi32, #tpu.memory_space<smem>>
      %c1_i32_128 = arith.constant 1 : i32
      %163 = arith.addi %141, %c1_i32_128 : i32
      %164 = arith.index_cast %163 : i32 to index
      %165 = memref.load %arg2[%164] : memref<24xi32, #tpu.memory_space<smem>>
      %c1_i32_129 = arith.constant 1 : i32
      %c0_i32_130 = arith.constant 0 : i32
      %c1_i32_131 = arith.constant 1 : i32
      %c0_i32_132 = arith.constant 0 : i32
      %166 = tpu.memref_slice %arg5[%162, %c0_i32_132] : memref<64x128xf32, #tpu.memory_space<any>> -> memref<1x128xf32, #tpu.memory_space<any>>
      %167 = tpu.memref_squeeze %166 : memref<1x128xf32, #tpu.memory_space<any>> -> memref<128xf32, #tpu.memory_space<any>>
      %c0_i32_133 = arith.constant 0 : i32
      %168 = tpu.memref_slice %arg8[%140, %c1_i32_129, %c0_i32_133] : memref<2x8x128xf32, #tpu.memory_space<vmem>> -> memref<1x1x128xf32, #tpu.memory_space<vmem>>
      %169 = tpu.memref_squeeze %168 : memref<1x1x128xf32, #tpu.memory_space<vmem>> -> memref<128xf32, #tpu.memory_space<vmem>>
      %170 = tpu.memref_slice %arg10[%140, %c0_i32_130, %c1_i32_131] : memref<2x2x8x!tpu.dma_semaphore, #tpu.memory_space<semaphore_mem>> -> memref<1x1x1x!tpu.dma_semaphore, #tpu.memory_space<semaphore_mem>>
      %171 = tpu.memref_squeeze %170 : memref<1x1x1x!tpu.dma_semaphore, #tpu.memory_space<semaphore_mem>> -> memref<!tpu.dma_semaphore, #tpu.memory_space<semaphore_mem>>
      tpu.enqueue_dma source(%167 : memref<128xf32, #tpu.memory_space<any>>) target(%169 : memref<128xf32, #tpu.memory_space<vmem>>) target_semaphore(%171 : memref<!tpu.dma_semaphore, #tpu.memory_space<semaphore_mem>>)
      %c1_i32_134 = arith.constant 1 : i32
      %c1_i32_135 = arith.constant 1 : i32
      %c1_i32_136 = arith.constant 1 : i32
      %c0_i32_137 = arith.constant 0 : i32
      %172 = tpu.memref_slice %arg6[%165, %c0_i32_137] : memref<64x128xf32, #tpu.memory_space<any>> -> memref<1x128xf32, #tpu.memory_space<any>>
      %173 = tpu.memref_squeeze %172 : memref<1x128xf32, #tpu.memory_space<any>> -> memref<128xf32, #tpu.memory_space<any>>
      %c0_i32_138 = arith.constant 0 : i32
      %174 = tpu.memref_slice %arg9[%140, %c1_i32_134, %c0_i32_138] : memref<2x8x128xf32, #tpu.memory_space<vmem>> -> memref<1x1x128xf32, #tpu.memory_space<vmem>>
      %175 = tpu.memref_squeeze %174 : memref<1x1x128xf32, #tpu.memory_space<vmem>> -> memref<128xf32, #tpu.memory_space<vmem>>
      %176 = tpu.memref_slice %arg10[%140, %c1_i32_135, %c1_i32_136] : memref<2x2x8x!tpu.dma_semaphore, #tpu.memory_space<semaphore_mem>> -> memref<1x1x1x!tpu.dma_semaphore, #tpu.memory_space<semaphore_mem>>
      %177 = tpu.memref_squeeze %176 : memref<1x1x1x!tpu.dma_semaphore, #tpu.memory_space<semaphore_mem>> -> memref<!tpu.dma_semaphore, #tpu.memory_space<semaphore_mem>>
      tpu.enqueue_dma source(%173 : memref<128xf32, #tpu.memory_space<any>>) target(%175 : memref<128xf32, #tpu.memory_space<vmem>>) target_semaphore(%177 : memref<!tpu.dma_semaphore, #tpu.memory_space<semaphore_mem>>)
      %c2_i32_139 = arith.constant 2 : i32
      %178 = arith.addi %141, %c2_i32_139 : i32
      %179 = arith.index_cast %178 : i32 to index
      %180 = memref.load %arg1[%179] : memref<24xi32, #tpu.memory_space<smem>>
      %c2_i32_140 = arith.constant 2 : i32
      %181 = arith.addi %141, %c2_i32_140 : i32
      %182 = arith.index_cast %181 : i32 to index
      %183 = memref.load %arg2[%182] : memref<24xi32, #tpu.memory_space<smem>>
      %c2_i32_141 = arith.constant 2 : i32
      %c0_i32_142 = arith.constant 0 : i32
      %c2_i32_143 = arith.constant 2 : i32
      %c0_i32_144 = arith.constant 0 : i32
      %184 = tpu.memref_slice %arg5[%180, %c0_i32_144] : memref<64x128xf32, #tpu.memory_space<any>> -> memref<1x128xf32, #tpu.memory_space<any>>
      %185 = tpu.memref_squeeze %184 : memref<1x128xf32, #tpu.memory_space<any>> -> memref<128xf32, #tpu.memory_space<any>>
      %c0_i32_145 = arith.constant 0 : i32
      %186 = tpu.memref_slice %arg8[%140, %c2_i32_141, %c0_i32_145] : memref<2x8x128xf32, #tpu.memory_space<vmem>> -> memref<1x1x128xf32, #tpu.memory_space<vmem>>
      %187 = tpu.memref_squeeze %186 : memref<1x1x128xf32, #tpu.memory_space<vmem>> -> memref<128xf32, #tpu.memory_space<vmem>>
      %188 = tpu.memref_slice %arg10[%140, %c0_i32_142, %c2_i32_143] : memref<2x2x8x!tpu.dma_semaphore, #tpu.memory_space<semaphore_mem>> -> memref<1x1x1x!tpu.dma_semaphore, #tpu.memory_space<semaphore_mem>>
      %189 = tpu.memref_squeeze %188 : memref<1x1x1x!tpu.dma_semaphore, #tpu.memory_space<semaphore_mem>> -> memref<!tpu.dma_semaphore, #tpu.memory_space<semaphore_mem>>
      tpu.enqueue_dma source(%185 : memref<128xf32, #tpu.memory_space<any>>) target(%187 : memref<128xf32, #tpu.memory_space<vmem>>) target_semaphore(%189 : memref<!tpu.dma_semaphore, #tpu.memory_space<semaphore_mem>>)
      %c2_i32_146 = arith.constant 2 : i32
      %c1_i32_147 = arith.constant 1 : i32
      %c2_i32_148 = arith.constant 2 : i32
      %c0_i32_149 = arith.constant 0 : i32
      %190 = tpu.memref_slice %arg6[%183, %c0_i32_149] : memref<64x128xf32, #tpu.memory_space<any>> -> memref<1x128xf32, #tpu.memory_space<any>>
      %191 = tpu.memref_squeeze %190 : memref<1x128xf32, #tpu.memory_space<any>> -> memref<128xf32, #tpu.memory_space<any>>
      %c0_i32_150 = arith.constant 0 : i32
      %192 = tpu.memref_slice %arg9[%140, %c2_i32_146, %c0_i32_150] : memref<2x8x128xf32, #tpu.memory_space<vmem>> -> memref<1x1x128xf32, #tpu.memory_space<vmem>>
      %193 = tpu.memref_squeeze %192 : memref<1x1x128xf32, #tpu.memory_space<vmem>> -> memref<128xf32, #tpu.memory_space<vmem>>
      %194 = tpu.memref_slice %arg10[%140, %c1_i32_147, %c2_i32_148] : memref<2x2x8x!tpu.dma_semaphore, #tpu.memory_space<semaphore_mem>> -> memref<1x1x1x!tpu.dma_semaphore, #tpu.memory_space<semaphore_mem>>
      %195 = tpu.memref_squeeze %194 : memref<1x1x1x!tpu.dma_semaphore, #tpu.memory_space<semaphore_mem>> -> memref<!tpu.dma_semaphore, #tpu.memory_space<semaphore_mem>>
      tpu.enqueue_dma source(%191 : memref<128xf32, #tpu.memory_space<any>>) target(%193 : memref<128xf32, #tpu.memory_space<vmem>>) target_semaphore(%195 : memref<!tpu.dma_semaphore, #tpu.memory_space<semaphore_mem>>)
      %c3_i32_151 = arith.constant 3 : i32
      %196 = arith.addi %141, %c3_i32_151 : i32
      %197 = arith.index_cast %196 : i32 to index
      %198 = memref.load %arg1[%197] : memref<24xi32, #tpu.memory_space<smem>>
      %c3_i32_152 = arith.constant 3 : i32
      %199 = arith.addi %141, %c3_i32_152 : i32
      %200 = arith.index_cast %199 : i32 to index
      %201 = memref.load %arg2[%200] : memref<24xi32, #tpu.memory_space<smem>>
      %c3_i32_153 = arith.constant 3 : i32
      %c0_i32_154 = arith.constant 0 : i32
      %c3_i32_155 = arith.constant 3 : i32
      %c0_i32_156 = arith.constant 0 : i32
      %202 = tpu.memref_slice %arg5[%198, %c0_i32_156] : memref<64x128xf32, #tpu.memory_space<any>> -> memref<1x128xf32, #tpu.memory_space<any>>
      %203 = tpu.memref_squeeze %202 : memref<1x128xf32, #tpu.memory_space<any>> -> memref<128xf32, #tpu.memory_space<any>>
      %c0_i32_157 = arith.constant 0 : i32
      %204 = tpu.memref_slice %arg8[%140, %c3_i32_153, %c0_i32_157] : memref<2x8x128xf32, #tpu.memory_space<vmem>> -> memref<1x1x128xf32, #tpu.memory_space<vmem>>
      %205 = tpu.memref_squeeze %204 : memref<1x1x128xf32, #tpu.memory_space<vmem>> -> memref<128xf32, #tpu.memory_space<vmem>>
      %206 = tpu.memref_slice %arg10[%140, %c0_i32_154, %c3_i32_155] : memref<2x2x8x!tpu.dma_semaphore, #tpu.memory_space<semaphore_mem>> -> memref<1x1x1x!tpu.dma_semaphore, #tpu.memory_space<semaphore_mem>>
      %207 = tpu.memref_squeeze %206 : memref<1x1x1x!tpu.dma_semaphore, #tpu.memory_space<semaphore_mem>> -> memref<!tpu.dma_semaphore, #tpu.memory_space<semaphore_mem>>
      tpu.enqueue_dma source(%203 : memref<128xf32, #tpu.memory_space<any>>) target(%205 : memref<128xf32, #tpu.memory_space<vmem>>) target_semaphore(%207 : memref<!tpu.dma_semaphore, #tpu.memory_space<semaphore_mem>>)
      %c3_i32_158 = arith.constant 3 : i32
      %c1_i32_159 = arith.constant 1 : i32
      %c3_i32_160 = arith.constant 3 : i32
      %c0_i32_161 = arith.constant 0 : i32
      %208 = tpu.memref_slice %arg6[%201, %c0_i32_161] : memref<64x128xf32, #tpu.memory_space<any>> -> memref<1x128xf32, #tpu.memory_space<any>>
      %209 = tpu.memref_squeeze %208 : memref<1x128xf32, #tpu.memory_space<any>> -> memref<128xf32, #tpu.memory_space<any>>
      %c0_i32_162 = arith.constant 0 : i32
      %210 = tpu.memref_slice %arg9[%140, %c3_i32_158, %c0_i32_162] : memref<2x8x128xf32, #tpu.memory_space<vmem>> -> memref<1x1x128xf32, #tpu.memory_space<vmem>>
      %211 = tpu.memref_squeeze %210 : memref<1x1x128xf32, #tpu.memory_space<vmem>> -> memref<128xf32, #tpu.memory_space<vmem>>
      %212 = tpu.memref_slice %arg10[%140, %c1_i32_159, %c3_i32_160] : memref<2x2x8x!tpu.dma_semaphore, #tpu.memory_space<semaphore_mem>> -> memref<1x1x1x!tpu.dma_semaphore, #tpu.memory_space<semaphore_mem>>
      %213 = tpu.memref_squeeze %212 : memref<1x1x1x!tpu.dma_semaphore, #tpu.memory_space<semaphore_mem>> -> memref<!tpu.dma_semaphore, #tpu.memory_space<semaphore_mem>>
      tpu.enqueue_dma source(%209 : memref<128xf32, #tpu.memory_space<any>>) target(%211 : memref<128xf32, #tpu.memory_space<vmem>>) target_semaphore(%213 : memref<!tpu.dma_semaphore, #tpu.memory_space<semaphore_mem>>)
      %c4_i32_163 = arith.constant 4 : i32
      %214 = arith.addi %141, %c4_i32_163 : i32
      %215 = arith.index_cast %214 : i32 to index
      %216 = memref.load %arg1[%215] : memref<24xi32, #tpu.memory_space<smem>>
      %c4_i32_164 = arith.constant 4 : i32
      %217 = arith.addi %141, %c4_i32_164 : i32
      %218 = arith.index_cast %217 : i32 to index
      %219 = memref.load %arg2[%218] : memref<24xi32, #tpu.memory_space<smem>>
      %c4_i32_165 = arith.constant 4 : i32
      %c0_i32_166 = arith.constant 0 : i32
      %c4_i32_167 = arith.constant 4 : i32
      %c0_i32_168 = arith.constant 0 : i32
      %220 = tpu.memref_slice %arg5[%216, %c0_i32_168] : memref<64x128xf32, #tpu.memory_space<any>> -> memref<1x128xf32, #tpu.memory_space<any>>
      %221 = tpu.memref_squeeze %220 : memref<1x128xf32, #tpu.memory_space<any>> -> memref<128xf32, #tpu.memory_space<any>>
      %c0_i32_169 = arith.constant 0 : i32
      %222 = tpu.memref_slice %arg8[%140, %c4_i32_165, %c0_i32_169] : memref<2x8x128xf32, #tpu.memory_space<vmem>> -> memref<1x1x128xf32, #tpu.memory_space<vmem>>
      %223 = tpu.memref_squeeze %222 : memref<1x1x128xf32, #tpu.memory_space<vmem>> -> memref<128xf32, #tpu.memory_space<vmem>>
      %224 = tpu.memref_slice %arg10[%140, %c0_i32_166, %c4_i32_167] : memref<2x2x8x!tpu.dma_semaphore, #tpu.memory_space<semaphore_mem>> -> memref<1x1x1x!tpu.dma_semaphore, #tpu.memory_space<semaphore_mem>>
      %225 = tpu.memref_squeeze %224 : memref<1x1x1x!tpu.dma_semaphore, #tpu.memory_space<semaphore_mem>> -> memref<!tpu.dma_semaphore, #tpu.memory_space<semaphore_mem>>
      tpu.enqueue_dma source(%221 : memref<128xf32, #tpu.memory_space<any>>) target(%223 : memref<128xf32, #tpu.memory_space<vmem>>) target_semaphore(%225 : memref<!tpu.dma_semaphore, #tpu.memory_space<semaphore_mem>>)
      %c4_i32_170 = arith.constant 4 : i32
      %c1_i32_171 = arith.constant 1 : i32
      %c4_i32_172 = arith.constant 4 : i32
      %c0_i32_173 = arith.constant 0 : i32
      %226 = tpu.memref_slice %arg6[%219, %c0_i32_173] : memref<64x128xf32, #tpu.memory_space<any>> -> memref<1x128xf32, #tpu.memory_space<any>>
      %227 = tpu.memref_squeeze %226 : memref<1x128xf32, #tpu.memory_space<any>> -> memref<128xf32, #tpu.memory_space<any>>
      %c0_i32_174 = arith.constant 0 : i32
      %228 = tpu.memref_slice %arg9[%140, %c4_i32_170, %c0_i32_174] : memref<2x8x128xf32, #tpu.memory_space<vmem>> -> memref<1x1x128xf32, #tpu.memory_space<vmem>>
      %229 = tpu.memref_squeeze %228 : memref<1x1x128xf32, #tpu.memory_space<vmem>> -> memref<128xf32, #tpu.memory_space<vmem>>
      %230 = tpu.memref_slice %arg10[%140, %c1_i32_171, %c4_i32_172] : memref<2x2x8x!tpu.dma_semaphore, #tpu.memory_space<semaphore_mem>> -> memref<1x1x1x!tpu.dma_semaphore, #tpu.memory_space<semaphore_mem>>
      %231 = tpu.memref_squeeze %230 : memref<1x1x1x!tpu.dma_semaphore, #tpu.memory_space<semaphore_mem>> -> memref<!tpu.dma_semaphore, #tpu.memory_space<semaphore_mem>>
      tpu.enqueue_dma source(%227 : memref<128xf32, #tpu.memory_space<any>>) target(%229 : memref<128xf32, #tpu.memory_space<vmem>>) target_semaphore(%231 : memref<!tpu.dma_semaphore, #tpu.memory_space<semaphore_mem>>)
      %c5_i32_175 = arith.constant 5 : i32
      %232 = arith.addi %141, %c5_i32_175 : i32
      %233 = arith.index_cast %232 : i32 to index
      %234 = memref.load %arg1[%233] : memref<24xi32, #tpu.memory_space<smem>>
      %c5_i32_176 = arith.constant 5 : i32
      %235 = arith.addi %141, %c5_i32_176 : i32
      %236 = arith.index_cast %235 : i32 to index
      %237 = memref.load %arg2[%236] : memref<24xi32, #tpu.memory_space<smem>>
      %c5_i32_177 = arith.constant 5 : i32
      %c0_i32_178 = arith.constant 0 : i32
      %c5_i32_179 = arith.constant 5 : i32
      %c0_i32_180 = arith.constant 0 : i32
      %238 = tpu.memref_slice %arg5[%234, %c0_i32_180] : memref<64x128xf32, #tpu.memory_space<any>> -> memref<1x128xf32, #tpu.memory_space<any>>
      %239 = tpu.memref_squeeze %238 : memref<1x128xf32, #tpu.memory_space<any>> -> memref<128xf32, #tpu.memory_space<any>>
      %c0_i32_181 = arith.constant 0 : i32
      %240 = tpu.memref_slice %arg8[%140, %c5_i32_177, %c0_i32_181] : memref<2x8x128xf32, #tpu.memory_space<vmem>> -> memref<1x1x128xf32, #tpu.memory_space<vmem>>
      %241 = tpu.memref_squeeze %240 : memref<1x1x128xf32, #tpu.memory_space<vmem>> -> memref<128xf32, #tpu.memory_space<vmem>>
      %242 = tpu.memref_slice %arg10[%140, %c0_i32_178, %c5_i32_179] : memref<2x2x8x!tpu.dma_semaphore, #tpu.memory_space<semaphore_mem>> -> memref<1x1x1x!tpu.dma_semaphore, #tpu.memory_space<semaphore_mem>>
      %243 = tpu.memref_squeeze %242 : memref<1x1x1x!tpu.dma_semaphore, #tpu.memory_space<semaphore_mem>> -> memref<!tpu.dma_semaphore, #tpu.memory_space<semaphore_mem>>
      tpu.enqueue_dma source(%239 : memref<128xf32, #tpu.memory_space<any>>) target(%241 : memref<128xf32, #tpu.memory_space<vmem>>) target_semaphore(%243 : memref<!tpu.dma_semaphore, #tpu.memory_space<semaphore_mem>>)
      %c5_i32_182 = arith.constant 5 : i32
      %c1_i32_183 = arith.constant 1 : i32
      %c5_i32_184 = arith.constant 5 : i32
      %c0_i32_185 = arith.constant 0 : i32
      %244 = tpu.memref_slice %arg6[%237, %c0_i32_185] : memref<64x128xf32, #tpu.memory_space<any>> -> memref<1x128xf32, #tpu.memory_space<any>>
      %245 = tpu.memref_squeeze %244 : memref<1x128xf32, #tpu.memory_space<any>> -> memref<128xf32, #tpu.memory_space<any>>
      %c0_i32_186 = arith.constant 0 : i32
      %246 = tpu.memref_slice %arg9[%140, %c5_i32_182, %c0_i32_186] : memref<2x8x128xf32, #tpu.memory_space<vmem>> -> memref<1x1x128xf32, #tpu.memory_space<vmem>>
      %247 = tpu.memref_squeeze %246 : memref<1x1x128xf32, #tpu.memory_space<vmem>> -> memref<128xf32, #tpu.memory_space<vmem>>
      %248 = tpu.memref_slice %arg10[%140, %c1_i32_183, %c5_i32_184] : memref<2x2x8x!tpu.dma_semaphore, #tpu.memory_space<semaphore_mem>> -> memref<1x1x1x!tpu.dma_semaphore, #tpu.memory_space<semaphore_mem>>
      %249 = tpu.memref_squeeze %248 : memref<1x1x1x!tpu.dma_semaphore, #tpu.memory_space<semaphore_mem>> -> memref<!tpu.dma_semaphore, #tpu.memory_space<semaphore_mem>>
      tpu.enqueue_dma source(%245 : memref<128xf32, #tpu.memory_space<any>>) target(%247 : memref<128xf32, #tpu.memory_space<vmem>>) target_semaphore(%249 : memref<!tpu.dma_semaphore, #tpu.memory_space<semaphore_mem>>)
      %c6_i32_187 = arith.constant 6 : i32
      %250 = arith.addi %141, %c6_i32_187 : i32
      %251 = arith.index_cast %250 : i32 to index
      %252 = memref.load %arg1[%251] : memref<24xi32, #tpu.memory_space<smem>>
      %c6_i32_188 = arith.constant 6 : i32
      %253 = arith.addi %141, %c6_i32_188 : i32
      %254 = arith.index_cast %253 : i32 to index
      %255 = memref.load %arg2[%254] : memref<24xi32, #tpu.memory_space<smem>>
      %c6_i32_189 = arith.constant 6 : i32
      %c0_i32_190 = arith.constant 0 : i32
      %c6_i32_191 = arith.constant 6 : i32
      %c0_i32_192 = arith.constant 0 : i32
      %256 = tpu.memref_slice %arg5[%252, %c0_i32_192] : memref<64x128xf32, #tpu.memory_space<any>> -> memref<1x128xf32, #tpu.memory_space<any>>
      %257 = tpu.memref_squeeze %256 : memref<1x128xf32, #tpu.memory_space<any>> -> memref<128xf32, #tpu.memory_space<any>>
      %c0_i32_193 = arith.constant 0 : i32
      %258 = tpu.memref_slice %arg8[%140, %c6_i32_189, %c0_i32_193] : memref<2x8x128xf32, #tpu.memory_space<vmem>> -> memref<1x1x128xf32, #tpu.memory_space<vmem>>
      %259 = tpu.memref_squeeze %258 : memref<1x1x128xf32, #tpu.memory_space<vmem>> -> memref<128xf32, #tpu.memory_space<vmem>>
      %260 = tpu.memref_slice %arg10[%140, %c0_i32_190, %c6_i32_191] : memref<2x2x8x!tpu.dma_semaphore, #tpu.memory_space<semaphore_mem>> -> memref<1x1x1x!tpu.dma_semaphore, #tpu.memory_space<semaphore_mem>>
      %261 = tpu.memref_squeeze %260 : memref<1x1x1x!tpu.dma_semaphore, #tpu.memory_space<semaphore_mem>> -> memref<!tpu.dma_semaphore, #tpu.memory_space<semaphore_mem>>
      tpu.enqueue_dma source(%257 : memref<128xf32, #tpu.memory_space<any>>) target(%259 : memref<128xf32, #tpu.memory_space<vmem>>) target_semaphore(%261 : memref<!tpu.dma_semaphore, #tpu.memory_space<semaphore_mem>>)
      %c6_i32_194 = arith.constant 6 : i32
      %c1_i32_195 = arith.constant 1 : i32
      %c6_i32_196 = arith.constant 6 : i32
      %c0_i32_197 = arith.constant 0 : i32
      %262 = tpu.memref_slice %arg6[%255, %c0_i32_197] : memref<64x128xf32, #tpu.memory_space<any>> -> memref<1x128xf32, #tpu.memory_space<any>>
      %263 = tpu.memref_squeeze %262 : memref<1x128xf32, #tpu.memory_space<any>> -> memref<128xf32, #tpu.memory_space<any>>
      %c0_i32_198 = arith.constant 0 : i32
      %264 = tpu.memref_slice %arg9[%140, %c6_i32_194, %c0_i32_198] : memref<2x8x128xf32, #tpu.memory_space<vmem>> -> memref<1x1x128xf32, #tpu.memory_space<vmem>>
      %265 = tpu.memref_squeeze %264 : memref<1x1x128xf32, #tpu.memory_space<vmem>> -> memref<128xf32, #tpu.memory_space<vmem>>
      %266 = tpu.memref_slice %arg10[%140, %c1_i32_195, %c6_i32_196] : memref<2x2x8x!tpu.dma_semaphore, #tpu.memory_space<semaphore_mem>> -> memref<1x1x1x!tpu.dma_semaphore, #tpu.memory_space<semaphore_mem>>
      %267 = tpu.memref_squeeze %266 : memref<1x1x1x!tpu.dma_semaphore, #tpu.memory_space<semaphore_mem>> -> memref<!tpu.dma_semaphore, #tpu.memory_space<semaphore_mem>>
      tpu.enqueue_dma source(%263 : memref<128xf32, #tpu.memory_space<any>>) target(%265 : memref<128xf32, #tpu.memory_space<vmem>>) target_semaphore(%267 : memref<!tpu.dma_semaphore, #tpu.memory_space<semaphore_mem>>)
      %c7_i32_199 = arith.constant 7 : i32
      %268 = arith.addi %141, %c7_i32_199 : i32
      %269 = arith.index_cast %268 : i32 to index
      %270 = memref.load %arg1[%269] : memref<24xi32, #tpu.memory_space<smem>>
      %c7_i32_200 = arith.constant 7 : i32
      %271 = arith.addi %141, %c7_i32_200 : i32
      %272 = arith.index_cast %271 : i32 to index
      %273 = memref.load %arg2[%272] : memref<24xi32, #tpu.memory_space<smem>>
      %c7_i32_201 = arith.constant 7 : i32
      %c0_i32_202 = arith.constant 0 : i32
      %c7_i32_203 = arith.constant 7 : i32
      %c0_i32_204 = arith.constant 0 : i32
      %274 = tpu.memref_slice %arg5[%270, %c0_i32_204] : memref<64x128xf32, #tpu.memory_space<any>> -> memref<1x128xf32, #tpu.memory_space<any>>
      %275 = tpu.memref_squeeze %274 : memref<1x128xf32, #tpu.memory_space<any>> -> memref<128xf32, #tpu.memory_space<any>>
      %c0_i32_205 = arith.constant 0 : i32
      %276 = tpu.memref_slice %arg8[%140, %c7_i32_201, %c0_i32_205] : memref<2x8x128xf32, #tpu.memory_space<vmem>> -> memref<1x1x128xf32, #tpu.memory_space<vmem>>
      %277 = tpu.memref_squeeze %276 : memref<1x1x128xf32, #tpu.memory_space<vmem>> -> memref<128xf32, #tpu.memory_space<vmem>>
      %278 = tpu.memref_slice %arg10[%140, %c0_i32_202, %c7_i32_203] : memref<2x2x8x!tpu.dma_semaphore, #tpu.memory_space<semaphore_mem>> -> memref<1x1x1x!tpu.dma_semaphore, #tpu.memory_space<semaphore_mem>>
      %279 = tpu.memref_squeeze %278 : memref<1x1x1x!tpu.dma_semaphore, #tpu.memory_space<semaphore_mem>> -> memref<!tpu.dma_semaphore, #tpu.memory_space<semaphore_mem>>
      tpu.enqueue_dma source(%275 : memref<128xf32, #tpu.memory_space<any>>) target(%277 : memref<128xf32, #tpu.memory_space<vmem>>) target_semaphore(%279 : memref<!tpu.dma_semaphore, #tpu.memory_space<semaphore_mem>>)
      %c7_i32_206 = arith.constant 7 : i32
      %c1_i32_207 = arith.constant 1 : i32
      %c7_i32_208 = arith.constant 7 : i32
      %c0_i32_209 = arith.constant 0 : i32
      %280 = tpu.memref_slice %arg6[%273, %c0_i32_209] : memref<64x128xf32, #tpu.memory_space<any>> -> memref<1x128xf32, #tpu.memory_space<any>>
      %281 = tpu.memref_squeeze %280 : memref<1x128xf32, #tpu.memory_space<any>> -> memref<128xf32, #tpu.memory_space<any>>
      %c0_i32_210 = arith.constant 0 : i32
      %282 = tpu.memref_slice %arg9[%140, %c7_i32_206, %c0_i32_210] : memref<2x8x128xf32, #tpu.memory_space<vmem>> -> memref<1x1x128xf32, #tpu.memory_space<vmem>>
      %283 = tpu.memref_squeeze %282 : memref<1x1x128xf32, #tpu.memory_space<vmem>> -> memref<128xf32, #tpu.memory_space<vmem>>
      %284 = tpu.memref_slice %arg10[%140, %c1_i32_207, %c7_i32_208] : memref<2x2x8x!tpu.dma_semaphore, #tpu.memory_space<semaphore_mem>> -> memref<1x1x1x!tpu.dma_semaphore, #tpu.memory_space<semaphore_mem>>
      %285 = tpu.memref_squeeze %284 : memref<1x1x1x!tpu.dma_semaphore, #tpu.memory_space<semaphore_mem>> -> memref<!tpu.dma_semaphore, #tpu.memory_space<semaphore_mem>>
      tpu.enqueue_dma source(%281 : memref<128xf32, #tpu.memory_space<any>>) target(%283 : memref<128xf32, #tpu.memory_space<vmem>>) target_semaphore(%285 : memref<!tpu.dma_semaphore, #tpu.memory_space<semaphore_mem>>)
    } else {
    }
    %113 = arith.index_cast %9 : i32 to index
    %c0 = arith.constant 0 : index
    %c0_99 = arith.constant 0 : index
    %114 = vector.load %arg8[%113, %c0, %c0_99] : memref<2x8x128xf32, #tpu.memory_space<vmem>>, vector<1x8x128xf32>
    %115 = vector.shape_cast %114 : vector<1x8x128xf32> to vector<8x128xf32>
    %116 = arith.index_cast %9 : i32 to index
    %c0_100 = arith.constant 0 : index
    %c0_101 = arith.constant 0 : index
    %117 = vector.load %arg9[%116, %c0_100, %c0_101] : memref<2x8x128xf32, #tpu.memory_space<vmem>>, vector<1x8x128xf32>
    %118 = vector.shape_cast %117 : vector<1x8x128xf32> to vector<8x128xf32>
    %119 = arith.mulf %115, %118 : vector<8x128xf32>
    %cst = arith.constant dense<0.000000e+00> : vector<8xf32>
    %120 = vector.multi_reduction <add>, %119, %cst [1] : vector<8x128xf32> to vector<8xf32>
    %121 = vector.shape_cast %120 : vector<8xf32> to vector<8x1xf32>
    %c0_102 = arith.constant 0 : index
    %c0_103 = arith.constant 0 : index
    %122 = vector.load %arg3[%c0_102, %c0_103] : memref<8x1xf32, #tpu.memory_space<vmem>>, vector<8x1xf32>
    %123 = math.log %122 : vector<8x1xf32>
    %124 = arith.subf %121, %123 : vector<8x1xf32>
    %c0_104 = arith.constant 0 : index
    %c0_105 = arith.constant 0 : index
    %125 = vector.load %arg4[%c0_104, %c0_105] : memref<8x1xf32, #tpu.memory_space<vmem>>, vector<8x1xf32>
    %126 = arith.mulf %125, %124 : vector<8x1xf32>
    %127 = arith.mulf %126, %124 : vector<8x1xf32>
    %c0_106 = arith.constant 0 : index
    %c0_107 = arith.constant 0 : index
    %128 = vector.load %arg7[%c0_106, %c0_107] : memref<1x1xf32, #tpu.memory_space<vmem>>, vector<1x1xf32>
    %129 = vector.shape_cast %127 : vector<8x1xf32> to vector<1x8x1xf32>
    %cst_108 = arith.constant dense<0.000000e+00> : vector<1xf32>
    %130 = vector.multi_reduction <add>, %129, %cst_108 [1, 2] : vector<1x8x1xf32> to vector<1xf32>
    %131 = vector.shape_cast %130 : vector<1xf32> to vector<1x1x1xf32>
    %132 = vector.extract %131[0, 0, 0] : f32 from vector<1x1x1xf32>
    %133 = vector.broadcast %132 : f32 to vector<1x1xf32>
    %134 = arith.addf %128, %133 : vector<1x1xf32>
    %c0_109 = arith.constant 0 : index
    %c0_110 = arith.constant 0 : index
    %135 = vector.load %arg7[%c0_109, %c0_110] : memref<1x1xf32, #tpu.memory_space<vmem>>, vector<1x1xf32>
    tpu.vector_store %arg7[%c0_109, %c0_110], %134 {strides = array<i32>} : memref<1x1xf32, #tpu.memory_space<vmem>>, vector<1x1xf32>,
    %c2_i32_111 = arith.constant 2 : i32
    %136 = arith.cmpi eq, %arg0, %c2_i32_111 : i32
    %137 = arith.extui %136 : i1 to i32
    %c0_i32_112 = arith.constant 0 : i32
    %138 = arith.cmpi ne, %137, %c0_i32_112 : i32
    scf.if %138 {
      %c0_113 = arith.constant 0 : index
      %c0_114 = arith.constant 0 : index
      %139 = vector.load %arg7[%c0_113, %c0_114] : memref<1x1xf32, #tpu.memory_space<vmem>>, vector<1x1xf32>
      %cst_115 = arith.constant 5.000000e-02 : f32
      %140 = vector.broadcast %cst_115 : f32 to vector<1x1xf32>
      %141 = arith.mulf %139, %140 : vector<1x1xf32>
      %c0_116 = arith.constant 0 : index
      %c0_117 = arith.constant 0 : index
      %142 = vector.load %arg7[%c0_116, %c0_117] : memref<1x1xf32, #tpu.memory_space<vmem>>, vector<1x1xf32>
      tpu.vector_store %arg7[%c0_116, %c0_117], %141 {strides = array<i32>} : memref<1x1xf32, #tpu.memory_space<vmem>>, vector<1x1xf32>,
    } else {
    }
    return
  }
  func.func @transform_0(%arg0: i32, %arg1: memref<24xi32, #tpu.memory_space<smem>>, %arg2: memref<24xi32, #tpu.memory_space<smem>>) -> (i32, i32) {
    %c0_i32 = arith.constant 0 : i32
    %c0_i32_0 = arith.constant 0 : i32
    return %arg0, %c0_i32 : i32, i32
  }
  func.func @transform_1(%arg0: i32, %arg1: memref<24xi32, #tpu.memory_space<smem>>, %arg2: memref<24xi32, #tpu.memory_space<smem>>) -> (i32, i32) {
    %c0_i32 = arith.constant 0 : i32
    %c0_i32_0 = arith.constant 0 : i32
    return %arg0, %c0_i32 : i32, i32
  }
  func.func @transform_4(%arg0: i32, %arg1: memref<24xi32, #tpu.memory_space<smem>>, %arg2: memref<24xi32, #tpu.memory_space<smem>>) -> (i32, i32) {
    %c0_i32 = arith.constant 0 : i32
    %c0_i32_0 = arith.constant 0 : i32
    %c0_i32_1 = arith.constant 0 : i32
    return %c0_i32, %c0_i32_0 : i32, i32
  }
}

</mosaic_0001>

<bundles_post_ra>
// kernel: tpu_custom_call.1
= control target key start
LH: loop header
LB: loop body
LE: loop exit
PB: predicated region body
PF: predicated region fallthrough
CT: control target
= control target key end

     0   :  { %s3049_s0 = inlined_call_operand.vmem [shape: s32[24], index: 0, kind: input, shape index: {}]   ;;  %s3050_s2 = inlined_call_operand.vmem [shape: f32[24,1], index: 2, kind: input, shape index: {}]   ;;  %s3051_s3 = inlined_call_operand.vmem [shape: f32[24,1], index: 3, kind: input, shape index: {}]   ;;  %s3052_s4 = inlined_call_operand.vmem [shape: f32[64,128], index: 4, kind: input, shape index: {}]   ;;  %s3053_s5 = inlined_call_operand.hbm [shape: f32[64,128], index: 5, kind: input, shape index: {}]   ;;  %s3054_s6 = inlined_call_operand.hbm [shape: f32[1,1], index: 6, kind: output, shape index: {}]   ;;  %s3055_s1 = inlined_call_operand.hbm [shape: s32[24], index: 1, kind: input, shape index: {}]  }
   0x1   :  { %3056 = sst [smem:[#allocation78_spill]] %s3050_s2  ;;  %s11_s23 = sshll.u32 %s3049_s0, 4  ;;  %s12_s23 = int_to_ptr.vmem [resolvable:$true] %s11_s23 }
   0x2   :  { %s2155_s24 = scalar_lea.vmem %s12_s23, 16  ;;  %p2160_p1 = scmp.lt.s32.totalorder %s12_s23, %s12_s23 }
   0x3   :  { %p2156_p0 = scmp.ne.s32.totalorder %s12_s23, %s2155_s24  ;;  %p2161_p2 = scmp.lt.s32.totalorder %s2155_s24, %s2155_s24 }
   0x5   :  { %p2162_p3 = por %p2161_p2, %p2160_p1 }
   0x7   :  { %p2163_p4 = pnand %p2162_p3, %p2156_p0 }
   0x9   :  { %2166 = shalt.err (!%p2163_p4)  }
   0xa   :  { %s2633_s25 = smov [#allocation6]   ;;  %s2167_s28 = scalar_lea.hbm %s3055_s1, 16 }
   0xb   :  { %14 = dma.vmem_to_smem %s12_s23, 16, %s2633_s25, [#allocation5] }
   0xc   :  { %p2168_p5 = scmp.ne.s32.totalorder %s3055_s1, %s2167_s28  ;;  %p2171_p6 = scmp.lt.u32.totalorder %s2167_s28, %s3055_s1 }
   0xe   :  { %p2173_p7 = pnand %p2171_p6, %p2168_p5 }
  0x10   :  { %2176 = shalt.err (!%p2173_p7)  }
  0x11   :  { %s2634_s8 = smov [#allocation7]  }
  0x12   :  { %16 = dma.hbm_to_smem %s3055_s1, 16, %s2634_s8, [#allocation5] }
  0x13   :  { %2591 = dma.done.wait [#allocation5], 32 }
  0x14   :  { %2592 = vsyncadd [#allocation5], 4294967264 }
  0x15   :  { %18 = sfence }
  0x16   :  { %19 = vsyncpa [#allocation9], 0  ;;  %s2696_s11 = smov 0  }
  0x17 LB: > { %s2702_s12 = sadd.s32 4294967295, %s2631_s11   ;;  %p1985_p8 = scmp.ge.s32.totalorder %s2631_s11, 1  ;;  %s2631_s11 = sphi %s2696_s11, %s25_s11  }
  0x18   : > { %p128_p9 = scmp.lt.s32.totalorder %s2631_s11, 4 }
  0x1a   : > { %p129_p10 = pnand %p1985_p8, %p128_p9 }
  0x1b   : > { %p148_p11 = scmp.lt.s32.totalorder (!%p129_p10), %s2702_s12, 2  ;;  %s157_s1 = ssub.s32 (!%p129_p10), 0, %s2702_s12 }
  0x1c   : > { %132 = sbr.rel (%p129_p10) target bundleno = 918 (0x396), region = 28  ;;  %p156_p12 = scmp.lt.s32.totalorder (!%p129_p10), %s2702_s12, 0 }
  0x1d   : > { %s1988_s14 = smin.u32 (!%p129_p10), %s2702_s12, %s157_s1  ;;  %s3057_s2 = sld [smem:[#allocation78_spill]] (!%p129_p10) }
  0x1e   : > { %s159_s16 = sand.u32 (!%p129_p10), 1, %s1988_s14   ;;  %p1991_p0 = scmp.ne.s32.totalorder (!%p129_p10), %s2702_s12, 0 }
  0x1f   : > { %s160_s23 = ssub.s32 (!%p129_p10), 0, %s159_s16 }
  0x23   : > { %s149_s13 = scalar_select %p148_p11, %s2702_s12, 2 }
  0x24   : > { %s3059_s23 = smov (!%p156_p12, %s160_s23), %s159_s16  ;;  %171 = sbr.rel (%p1991_p0) target bundleno = 260 (0x104), region = 32 }
  0x25   : > { %s1986_s15 = sshll.u32 %s149_s13, 3  ;;  %p1990_p13 = scmp.lt.s32.totalorder %s3059_s23, 0  ;;  %vm172_vm0 = vcmask (!%p1991_p0), 0   ;;  %v2635_v0 = vmov (!%p1991_p0), 0.0  }
  0x26   : > { %s2714_s19 = scalar_lea.vmem %s3057_s2, %s1986_s15  ;;  %s2719_s22 = scalar_lea.vmem %s3051_s3, %s1986_s15  ;;  %173 = vst.msk [vmem:[#allocation8] sm:$0x1] (!%p1991_p0), %vm172_vm0, %v2635_v0 }
  0x27   : > { %s166_s24 = sadd.s32 2, %s3059_s23  ;;  %s174_s25 = sld [smem:[#allocation6]] (!%p1991_p0) }
  0x28   : > { %s3061_s24 = smov (!%p1990_p13, %s166_s24), %s3059_s23  ;;  %s175_s26 = sld [smem:[#allocation7]] (!%p1991_p0) }
  0x2d   : > { %s176_s29 = scalar_lea.vmem %s3052_s4, %s174_s25 }
  0x2e   : > { %v194_v1 = vld [vmem:[%s176_s29] sm:$0x1] }
  0x2f   : > { %195 = vst [vmem:[#allocation2] sm:$0x1] %v194_v1 }
  0x30   : > { %220 = vsyncadd [#allocation4], 16  ;;  %s1992_s30 = sshll.u32 %s175_s26, 4  ;;  %s2636_s9 = smov [#allocation3]  }
  0x31   : > { %s222_s8 = scalar_lea.hbm %s3053_s5, %s1992_s30  ;;  %s231_s10 = sshll.u32 %s2636_s9, 4  ;;  %s2730_s10 = int_to_ptr.vmem [resolvable:$true] %s231_s10 }
  0x32   : > { %s1993_s1 = sld [smem:[#allocation6 + $0x1]]  ;;  %s2177_s13 = scalar_lea.hbm %s222_s8, 16 }
  0x33   : > { %p2178_p1 = scmp.ne.s32.totalorder %s222_s8, %s2177_s13  ;;  %s2735_s16 = scalar_lea.hbm %s3053_s5, 1024 }
  0x34   : > { %p2180_p2 = scmp.lt.u32.totalorder %s222_s8, %s3053_s5  ;;  %p2181_p3 = scmp.lt.u32.totalorder %s2735_s16, %s2177_s13 }
  0x35   : > { %p2183_p5 = scmp.lt.u32.totalorder %s2177_s13, %s222_s8 }
  0x36   : > { %p2182_p4 = por %p2181_p3, %p2180_p2 }
  0x38   : > { %p2184_p6 = por %p2183_p5, %p2182_p4 }
  0x3a   : > { %p2185_p7 = pnand %p2184_p6, %p2178_p1 }
  0x3c   : > { %2188 = shalt.err (!%p2185_p7)  }
  0x3d   : > { %s2189_s20 = scalar_lea.vmem %s2730_s10, 16  ;;  %s2744_s21 = scalar_lea.vmem %s2730_s10, 256 }
  0x3e   : > { %p2190_p8 = scmp.ne.s32.totalorder %s2730_s10, %s2189_s20  ;;  %p2194_p9 = scmp.lt.s32.totalorder %s2730_s10, %s2730_s10 }
  0x3f   : > { %p2195_p10 = scmp.lt.s32.totalorder %s2744_s21, %s2189_s20 }
  0x41   : > { %p2196_p11 = por %p2195_p10, %p2194_p9 }
  0x43   : > { %p2197_p12 = pnand %p2196_p11, %p2190_p8 }
  0x45   : > { %2200 = shalt.err (!%p2197_p12)  }
  0x46   : > { %234 = dma.hbm_to_vmem [thread:$0]  %s222_s8, 16, %s2730_s10, [#allocation4 + $0x8] }
  0x47   : > { %s1994_s23 = sld [smem:[#allocation7 + $0x1]]  ;;  %s237_s27 = scalar_lea.vmem %s3052_s4, %s1993_s1 }
  0x48   : > { %v257_v2 = vld [vmem:[%s237_s27] sm:$0x1] }
  0x49   : > { %258 = vst [vmem:[#allocation2 + $0x1] sm:$0x1] %v257_v2 }
  0x4a   : > { %283 = vsyncadd [#allocation4 + $0x1], 16  ;;  %s2637_s0 = smov [#allocation3 + $0x1]   ;;  %s1996_s13 = sld [smem:[#allocation6 + $0x2]] }
  0x4b   : > { %s295_s9 = sshll.u32 %s2637_s0, 4  ;;  %s296_s9 = int_to_ptr.vmem [resolvable:$true] %s295_s9 }
  0x4d   : > { %s1995_s28 = sshll.u32 %s1994_s23, 4 }
  0x4e   : > { %s285_s7 = scalar_lea.hbm %s3053_s5, %s1995_s28 }
  0x4f   : > { %s2201_s14 = scalar_lea.hbm %s285_s7, 16  ;;  %p2204_p0 = scmp.lt.u32.totalorder %s285_s7, %s3053_s5 }
  0x50   : > { %p2202_p13 = scmp.ne.s32.totalorder %s285_s7, %s2201_s14  ;;  %p2205_p1 = scmp.lt.u32.totalorder %s2735_s16, %s2201_s14 }
  0x51   : > { %p2207_p3 = scmp.lt.u32.totalorder %s2201_s14, %s285_s7 }
  0x52   : > { %p2206_p2 = por %p2205_p1, %p2204_p0 }
  0x54   : > { %p2208_p4 = por %p2207_p3, %p2206_p2 }
  0x56   : > { %p2209_p5 = pnand %p2208_p4, %p2202_p13 }
  0x58   : > { %2212 = shalt.err (!%p2209_p5)  }
  0x59   : > { %s2213_s1 = scalar_lea.vmem %s296_s9, 16  ;;  %p2218_p7 = scmp.lt.s32.totalorder %s296_s9, %s2730_s10 }
  0x5a   : > { %p2214_p6 = scmp.ne.s32.totalorder %s296_s9, %s2213_s1  ;;  %p2219_p8 = scmp.lt.s32.totalorder %s2744_s21, %s2213_s1 }
  0x5c   : > { %p2220_p9 = por %p2219_p8, %p2218_p7 }
  0x5e   : > { %p2221_p10 = pnand %p2220_p9, %p2214_p6 }
  0x60   : > { %2224 = shalt.err (!%p2221_p10)  }
  0x61   : > { %298 = dma.hbm_to_vmem [thread:$0]  %s285_s7, 16, %s296_s9, [#allocation4 + $0x9] }
  0x62   : > { %s1997_s17 = sld [smem:[#allocation7 + $0x2]]  ;;  %s301_s23 = scalar_lea.vmem %s3052_s4, %s1996_s13 }
  0x63   : > { %v321_v3 = vld [vmem:[%s301_s23] sm:$0x1] }
  0x64   : > { %322 = vst [vmem:[#allocation2 + $0x2] sm:$0x1] %v321_v3 }
  0x65   : > { %347 = vsyncadd [#allocation4 + $0x2], 16  ;;  %s2638_s29 = smov [#allocation3 + $0x2]   ;;  %s1999_s0 = sld [smem:[#allocation6 + $0x3]] }
  0x66   : > { %s359_s30 = sshll.u32 %s2638_s29, 4  ;;  %s360_s30 = int_to_ptr.vmem [resolvable:$true] %s359_s30 }
  0x68   : > { %s1998_s25 = sshll.u32 %s1997_s17, 4 }
  0x69   : > { %s349_s28 = scalar_lea.hbm %s3053_s5, %s1998_s25 }
  0x6a   : > { %s2225_s14 = scalar_lea.hbm %s349_s28, 16  ;;  %p2228_p12 = scmp.lt.u32.totalorder %s349_s28, %s3053_s5 }
  0x6b   : > { %p2226_p11 = scmp.ne.s32.totalorder %s349_s28, %s2225_s14  ;;  %p2229_p13 = scmp.lt.u32.totalorder %s2735_s16, %s2225_s14 }
  0x6c   : > { %p2231_p1 = scmp.lt.u32.totalorder %s2225_s14, %s349_s28 }
  0x6d   : > { %p2230_p0 = por %p2229_p13, %p2228_p12 }
  0x6f   : > { %p2232_p2 = por %p2231_p1, %p2230_p0 }
  0x71   : > { %p2233_p3 = pnand %p2232_p2, %p2226_p11 }
  0x73   : > { %2236 = shalt.err (!%p2233_p3)  }
  0x74   : > { %s2237_s13 = scalar_lea.vmem %s360_s30, 16  ;;  %p2242_p5 = scmp.lt.s32.totalorder %s360_s30, %s2730_s10 }
  0x75   : > { %p2238_p4 = scmp.ne.s32.totalorder %s360_s30, %s2237_s13  ;;  %p2243_p6 = scmp.lt.s32.totalorder %s2744_s21, %s2237_s13 }
  0x77   : > { %p2244_p7 = por %p2243_p6, %p2242_p5 }
  0x79   : > { %p2245_p8 = pnand %p2244_p7, %p2238_p4 }
  0x7b   : > { %2248 = shalt.err (!%p2245_p8)  }
  0x7c   : > { %362 = dma.hbm_to_vmem [thread:$0]  %s349_s28, 16, %s360_s30, [#allocation4 + $0xa] }
  0x7d   : > { %s2000_s8 = sld [smem:[#allocation7 + $0x3]]  ;;  %s365_s17 = scalar_lea.vmem %s3052_s4, %s1999_s0 }
  0x7e   : > { %v385_v4 = vld [vmem:[%s365_s17] sm:$0x1] }
  0x7f   : > { %386 = vst [vmem:[#allocation2 + $0x3] sm:$0x1] %v385_v4 }
  0x80   : > { %411 = vsyncadd [#allocation4 + $0x3], 16  ;;  %s2639_s26 = smov [#allocation3 + $0x3]   ;;  %s2002_s29 = sld [smem:[#allocation6 + $0x4]] }
  0x81   : > { %s423_s27 = sshll.u32 %s2639_s26, 4  ;;  %s424_s27 = int_to_ptr.vmem [resolvable:$true] %s423_s27 }
  0x83   : > { %s2001_s18 = sshll.u32 %s2000_s8, 4 }
  0x84   : > { %s413_s25 = scalar_lea.hbm %s3053_s5, %s2001_s18 }
  0x85   : > { %s2249_s14 = scalar_lea.hbm %s413_s25, 16  ;;  %p2252_p10 = scmp.lt.u32.totalorder %s413_s25, %s3053_s5 }
  0x86   : > { %p2250_p9 = scmp.ne.s32.totalorder %s413_s25, %s2249_s14  ;;  %p2253_p11 = scmp.lt.u32.totalorder %s2735_s16, %s2249_s14 }
  0x87   : > { %p2255_p13 = scmp.lt.u32.totalorder %s2249_s14, %s413_s25 }
  0x88   : > { %p2254_p12 = por %p2253_p11, %p2252_p10 }
  0x8a   : > { %p2256_p0 = por %p2255_p13, %p2254_p12 }
  0x8c   : > { %p2257_p1 = pnand %p2256_p0, %p2250_p9 }
  0x8e   : > { %2260 = shalt.err (!%p2257_p1)  }
  0x8f   : > { %s2261_s0 = scalar_lea.vmem %s424_s27, 16  ;;  %p2266_p3 = scmp.lt.s32.totalorder %s424_s27, %s2730_s10 }
  0x90   : > { %p2262_p2 = scmp.ne.s32.totalorder %s424_s27, %s2261_s0  ;;  %p2267_p4 = scmp.lt.s32.totalorder %s2744_s21, %s2261_s0 }
  0x92   : > { %p2268_p5 = por %p2267_p4, %p2266_p3 }
  0x94   : > { %p2269_p6 = pnand %p2268_p5, %p2262_p2 }
  0x96   : > { %2272 = shalt.err (!%p2269_p6)  }
  0x97   : > { %426 = dma.hbm_to_vmem [thread:$0]  %s413_s25, 16, %s424_s27, [#allocation4 + $0xb] }
  0x98   : > { %s2003_s7 = sld [smem:[#allocation7 + $0x4]]  ;;  %s429_s8 = scalar_lea.vmem %s3052_s4, %s2002_s29 }
  0x99   : > { %v449_v5 = vld [vmem:[%s429_s8] sm:$0x1] }
  0x9a   : > { %450 = vst [vmem:[#allocation2 + $0x4] sm:$0x1] %v449_v5 }
  0x9b   : > { %475 = vsyncadd [#allocation4 + $0x4], 16  ;;  %s2640_s20 = smov [#allocation3 + $0x4]   ;;  %s2005_s26 = sld [smem:[#allocation6 + $0x5]] }
  0x9c   : > { %s487_s23 = sshll.u32 %s2640_s20, 4  ;;  %s488_s23 = int_to_ptr.vmem [resolvable:$true] %s487_s23 }
  0x9e   : > { %s2004_s15 = sshll.u32 %s2003_s7, 4 }
  0x9f   : > { %s477_s18 = scalar_lea.hbm %s3053_s5, %s2004_s15 }
  0xa0   : > { %s2273_s14 = scalar_lea.hbm %s477_s18, 16  ;;  %p2276_p8 = scmp.lt.u32.totalorder %s477_s18, %s3053_s5 }
  0xa1   : > { %p2274_p7 = scmp.ne.s32.totalorder %s477_s18, %s2273_s14  ;;  %p2277_p9 = scmp.lt.u32.totalorder %s2735_s16, %s2273_s14 }
  0xa2   : > { %p2279_p11 = scmp.lt.u32.totalorder %s2273_s14, %s477_s18 }
  0xa3   : > { %p2278_p10 = por %p2277_p9, %p2276_p8 }
  0xa5   : > { %p2280_p12 = por %p2279_p11, %p2278_p10 }
  0xa7   : > { %p2281_p13 = pnand %p2280_p12, %p2274_p7 }
  0xa9   : > { %2284 = shalt.err (!%p2281_p13)  }
  0xaa   : > { %s2285_s29 = scalar_lea.vmem %s488_s23, 16  ;;  %p2290_p1 = scmp.lt.s32.totalorder %s488_s23, %s2730_s10 }
  0xab   : > { %p2286_p0 = scmp.ne.s32.totalorder %s488_s23, %s2285_s29  ;;  %p2291_p2 = scmp.lt.s32.totalorder %s2744_s21, %s2285_s29 }
  0xad   : > { %p2292_p3 = por %p2291_p2, %p2290_p1 }
  0xaf   : > { %p2293_p4 = pnand %p2292_p3, %p2286_p0 }
  0xb1   : > { %2296 = shalt.err (!%p2293_p4)  }
  0xb2   : > { %490 = dma.hbm_to_vmem [thread:$0]  %s477_s18, 16, %s488_s23, [#allocation4 + $0xc] }
  0xb3   : > { %s2006_s28 = sld [smem:[#allocation7 + $0x5]]  ;;  %s493_s7 = scalar_lea.vmem %s3052_s4, %s2005_s26 }
  0xb4   : > { %v513_v6 = vld [vmem:[%s493_s7] sm:$0x1] }
  0xb5   : > { %514 = vst [vmem:[#allocation2 + $0x5] sm:$0x1] %v513_v6 }
  0xb6   : > { %539 = vsyncadd [#allocation4 + $0x5], 16  ;;  %s2641_s1 = smov [#allocation3 + $0x5]   ;;  %s2008_s20 = sld [smem:[#allocation6 + $0x6]] }
  0xb7   : > { %s551_s17 = sshll.u32 %s2641_s1, 4  ;;  %s552_s17 = int_to_ptr.vmem [resolvable:$true] %s551_s17 }
  0xb9   : > { %s2007_s9 = sshll.u32 %s2006_s28, 4 }
  0xba   : > { %s541_s15 = scalar_lea.hbm %s3053_s5, %s2007_s9 }
  0xbb   : > { %s2297_s14 = scalar_lea.hbm %s541_s15, 16  ;;  %p2300_p6 = scmp.lt.u32.totalorder %s541_s15, %s3053_s5 }
  0xbc   : > { %p2298_p5 = scmp.ne.s32.totalorder %s541_s15, %s2297_s14  ;;  %p2301_p7 = scmp.lt.u32.totalorder %s2735_s16, %s2297_s14 }
  0xbd   : > { %p2303_p9 = scmp.lt.u32.totalorder %s2297_s14, %s541_s15 }
  0xbe   : > { %p2302_p8 = por %p2301_p7, %p2300_p6 }
  0xc0   : > { %p2304_p10 = por %p2303_p9, %p2302_p8 }
  0xc2   : > { %p2305_p11 = pnand %p2304_p10, %p2298_p5 }
  0xc4   : > { %2308 = shalt.err (!%p2305_p11)  }
  0xc5   : > { %s2309_s26 = scalar_lea.vmem %s552_s17, 16  ;;  %p2314_p13 = scmp.lt.s32.totalorder %s552_s17, %s2730_s10 }
  0xc6   : > { %p2310_p12 = scmp.ne.s32.totalorder %s552_s17, %s2309_s26  ;;  %p2315_p0 = scmp.lt.s32.totalorder %s2744_s21, %s2309_s26 }
  0xc8   : > { %p2316_p1 = por %p2315_p0, %p2314_p13 }
  0xca   : > { %p2317_p2 = pnand %p2316_p1, %p2310_p12 }
  0xcc   : > { %2320 = shalt.err (!%p2317_p2)  }
  0xcd   : > { %554 = dma.hbm_to_vmem [thread:$0]  %s541_s15, 16, %s552_s17, [#allocation4 + $0xd] }
  0xce   : > { %s2009_s25 = sld [smem:[#allocation7 + $0x6]]  ;;  %s557_s28 = scalar_lea.vmem %s3052_s4, %s2008_s20 }
  0xcf   : > { %v577_v7 = vld [vmem:[%s557_s28] sm:$0x1] }
  0xd0   : > { %578 = vst [vmem:[#allocation2 + $0x6] sm:$0x1] %v577_v7 }
  0xd1   : > { %603 = vsyncadd [#allocation4 + $0x6], 16  ;;  %s2642_s13 = smov [#allocation3 + $0x6]   ;;  %s2011_s1 = sld [smem:[#allocation6 + $0x7]] }
  0xd2   : > { %s615_s8 = sshll.u32 %s2642_s13, 4  ;;  %s616_s8 = int_to_ptr.vmem [resolvable:$true] %s615_s8 }
  0xd4   : > { %s2010_s30 = sshll.u32 %s2009_s25, 4 }
  0xd5   : > { %s605_s9 = scalar_lea.hbm %s3053_s5, %s2010_s30 }
  0xd6   : > { %s2321_s14 = scalar_lea.hbm %s605_s9, 16  ;;  %p2324_p4 = scmp.lt.u32.totalorder %s605_s9, %s3053_s5 }
  0xd7   : > { %p2322_p3 = scmp.ne.s32.totalorder %s605_s9, %s2321_s14  ;;  %p2325_p5 = scmp.lt.u32.totalorder %s2735_s16, %s2321_s14 }
  0xd8   : > { %p2327_p7 = scmp.lt.u32.totalorder %s2321_s14, %s605_s9 }
  0xd9   : > { %p2326_p6 = por %p2325_p5, %p2324_p4 }
  0xdb   : > { %p2328_p8 = por %p2327_p7, %p2326_p6 }
  0xdd   : > { %p2329_p9 = pnand %p2328_p8, %p2322_p3 }
  0xdf   : > { %2332 = shalt.err (!%p2329_p9)  }
  0xe0   : > { %s2333_s20 = scalar_lea.vmem %s616_s8, 16  ;;  %p2338_p11 = scmp.lt.s32.totalorder %s616_s8, %s2730_s10 }
  0xe1   : > { %p2334_p10 = scmp.ne.s32.totalorder %s616_s8, %s2333_s20  ;;  %p2339_p12 = scmp.lt.s32.totalorder %s2744_s21, %s2333_s20 }
  0xe3   : > { %p2340_p13 = por %p2339_p12, %p2338_p11 }
  0xe5   : > { %p2341_p0 = pnand %p2340_p13, %p2334_p10 }
  0xe7   : > { %2344 = shalt.err (!%p2341_p0)  }
  0xe8   : > { %618 = dma.hbm_to_vmem [thread:$0]  %s605_s9, 16, %s616_s8, [#allocation4 + $0xe] }
  0xe9   : > { %s2012_s18 = sld [smem:[#allocation7 + $0x7]]  ;;  %s621_s25 = scalar_lea.vmem %s3052_s4, %s2011_s1 }
  0xea   : > { %v641_v8 = vld [vmem:[%s621_s25] sm:$0x1] }
  0xeb   : > { %642 = vst [vmem:[#allocation2 + $0x7] sm:$0x1] %v641_v8 }
  0xec   : > { %667 = vsyncadd [#allocation4 + $0x7], 16  ;;  %s2643_s0 = smov [#allocation3 + $0x7]  }
  0xed   : > { %s679_s7 = sshll.u32 %s2643_s0, 4  ;;  %s680_s7 = int_to_ptr.vmem [resolvable:$true] %s679_s7 }
  0xef   : > { %s2013_s27 = sshll.u32 %s2012_s18, 4 }
  0xf0   : > { %s669_s30 = scalar_lea.hbm %s3053_s5, %s2013_s27 }
  0xf1   : > { %s2345_s13 = scalar_lea.hbm %s669_s30, 16  ;;  %p2348_p2 = scmp.lt.u32.totalorder %s669_s30, %s3053_s5 }
  0xf2   : > { %p2346_p1 = scmp.ne.s32.totalorder %s669_s30, %s2345_s13  ;;  %p2349_p3 = scmp.lt.u32.totalorder %s2735_s16, %s2345_s13 }
  0xf3   : > { %p2351_p5 = scmp.lt.u32.totalorder %s2345_s13, %s669_s30 }
  0xf4   : > { %p2350_p4 = por %p2349_p3, %p2348_p2 }
  0xf6   : > { %p2352_p6 = por %p2351_p5, %p2350_p4 }
  0xf8   : > { %p2353_p7 = pnand %p2352_p6, %p2346_p1 }
  0xfa   : > { %2356 = shalt.err (!%p2353_p7)  }
  0xfb   : > { %s2357_s1 = scalar_lea.vmem %s680_s7, 16  ;;  %p2362_p9 = scmp.lt.s32.totalorder %s680_s7, %s2730_s10 }
  0xfc   : > { %p2358_p8 = scmp.ne.s32.totalorder %s680_s7, %s2357_s1  ;;  %p2363_p10 = scmp.lt.s32.totalorder %s2744_s21, %s2357_s1 }
  0xfe   : > { %p2364_p11 = por %p2363_p10, %p2362_p9 }
 0x100   : > { %p2365_p12 = pnand %p2364_p11, %p2358_p8 }
 0x102   : > { %2368 = shalt.err (!%p2365_p12)  }
 0x103   : > { %682 = dma.hbm_to_vmem [thread:$0]  %s669_s30, 16, %s680_s7, [#allocation4 + $0xf] }
 0x104 PF: > { %s2014_s14 = sshll.u32 %s3061_s24, 4 }
 0x105   : > { %s2835_s15 = scalar_lea.sflag [#allocation4], %s2014_s14 }
 0x106   : > { %2593 = dma.done.wait %s2835_s15, 16 }
 0x107   : > { %2594 = vsyncadd %s2835_s15, 4294967280  ;;  %s1644_s16 = scalar_lea.sflag %s2835_s15, 8 [#allocation4] }
 0x108   : > { %2595 = dma.done.wait %s1644_s16, 16 }
 0x109   : > { %2596 = vsyncadd %s1644_s16, 4294967280  ;;  %s1647_s10 = scalar_lea.sflag %s2835_s15, 1 [#allocation4] }
 0x10a   : > { %2597 = dma.done.wait %s1647_s10, 16 }
 0x10b   : > { %2598 = vsyncadd %s1647_s10, 4294967280  ;;  %s1650_s21 = scalar_lea.sflag %s2835_s15, 9 [#allocation4] }
 0x10c   : > { %2599 = dma.done.wait %s1650_s21, 16 }
 0x10d   : > { %2600 = vsyncadd %s1650_s21, 4294967280  ;;  %s1653_s17 = scalar_lea.sflag %s2835_s15, 2 [#allocation4] }
 0x10e   : > { %2601 = dma.done.wait %s1653_s17, 16 }
 0x10f   : > { %2602 = vsyncadd %s1653_s17, 4294967280  ;;  %s1656_s20 = scalar_lea.sflag %s2835_s15, 10 [#allocation4] }
 0x110   : > { %2603 = dma.done.wait %s1656_s20, 16 }
 0x111   : > { %2604 = vsyncadd %s1656_s20, 4294967280  ;;  %s1659_s18 = scalar_lea.sflag %s2835_s15, 3 [#allocation4] }
 0x112   : > { %2605 = dma.done.wait %s1659_s18, 16 }
 0x113   : > { %2606 = vsyncadd %s1659_s18, 4294967280  ;;  %s1662_s23 = scalar_lea.sflag %s2835_s15, 11 [#allocation4] }
 0x114   : > { %2607 = dma.done.wait %s1662_s23, 16 }
 0x115   : > { %2608 = vsyncadd %s1662_s23, 4294967280  ;;  %s1665_s26 = scalar_lea.sflag %s2835_s15, 4 [#allocation4] }
 0x116   : > { %2609 = dma.done.wait %s1665_s26, 16 }
 0x117   : > { %2610 = vsyncadd %s1665_s26, 4294967280  ;;  %s1668_s25 = scalar_lea.sflag %s2835_s15, 12 [#allocation4] }
 0x118   : > { %2611 = dma.done.wait %s1668_s25, 16 }
 0x119   : > { %2612 = vsyncadd %s1668_s25, 4294967280  ;;  %s1671_s27 = scalar_lea.sflag %s2835_s15, 5 [#allocation4] }
 0x11a   : > { %2613 = dma.done.wait %s1671_s27, 16 }
 0x11b   : > { %2614 = vsyncadd %s1671_s27, 4294967280  ;;  %s1674_s29 = scalar_lea.sflag %s2835_s15, 13 [#allocation4] }
 0x11c   : > { %2615 = dma.done.wait %s1674_s29, 16 }
 0x11d   : > { %2616 = vsyncadd %s1674_s29, 4294967280  ;;  %s1677_s28 = scalar_lea.sflag %s2835_s15, 6 [#allocation4] }
 0x11e   : > { %2617 = dma.done.wait %s1677_s28, 16 }
 0x11f   : > { %2618 = vsyncadd %s1677_s28, 4294967280  ;;  %s1680_s30 = scalar_lea.sflag %s2835_s15, 14 [#allocation4] }
 0x120   : > { %2619 = dma.done.wait %s1680_s30, 16 }
 0x121   : > { %2620 = vsyncadd %s1680_s30, 4294967280  ;;  %s1683_s0 = scalar_lea.sflag %s2835_s15, 7 [#allocation4] }
 0x122   : > { %2621 = dma.done.wait %s1683_s0, 16 }
 0x123   : > { %2622 = vsyncadd %s1683_s0, 4294967280  ;;  %s1686_s7 = scalar_lea.sflag %s2835_s15, 15 [#allocation4] }
 0x124   : > { %2623 = dma.done.wait %s1686_s7, 16 }
 0x125   : > { %2624 = vsyncadd %s1686_s7, 4294967280  ;;  %s747_s13 = sadd.s32 1, %s2702_s12 }
 0x126   : > { %p2030_p13 = scmp.ge.s32.totalorder %s747_s13, 3 }
 0x127   : > { %s752_s9 = ssub.s32 (!%p2030_p13), 1, %s3061_s24  ;;  %s2123_s8 = sshll.u32 (!%p2030_p13), %s2702_s12, 3 }
 0x128   : > { %751 = sbr.rel (%p2030_p13) target bundleno = 520 (0x208), region = 308  ;;  %s2857_s1 = sadd.s32 (!%p2030_p13), 8, %s2123_s8 }
 0x129   : > { %s754_s14 = sld [smem:[#allocation6 + %s2857_s1]] (!%p2030_p13)  ;;  %s2033_s10 = sshll.u32 (!%p2030_p13), %s752_s9, 4 }
 0x12a   : > { %s755_s16 = sld [smem:[#allocation7 + %s2857_s1]] (!%p2030_p13)  ;;  %s2032_s21 = sshll.u32 (!%p2030_p13), %s752_s9, 3 }
 0x12b   : > { %s2864_s18 = scalar_lea.vmem (!%p2030_p13), [#allocation2], %s2032_s21  ;;  %s2867_s23 = scalar_lea.sflag (!%p2030_p13), [#allocation4], %s2033_s10 }
 0x12f   : > { %s756_s20 = scalar_lea.vmem %s3052_s4, %s754_s14 }
 0x130   : > { %v778_v9 = vld [vmem:[%s756_s20] sm:$0x1] }
 0x131   : > { %779 = vst [vmem:[%s2864_s18] sm:$0x1] %v778_v9 }
 0x132   : > { %804 = vsyncadd %s2867_s23, 16  ;;  %s2034_s26 = sshll.u32 %s755_s16, 4  ;;  %s1700_s28 = scalar_lea.sflag %s2867_s23, 8 [#allocation4] }
 0x133   : > { %s2873_s29 = scalar_lea.hbm %s3053_s5, %s2034_s26  ;;  %s2876_s30 = scalar_lea.vmem [#allocation3], %s2032_s21 }
 0x134   : > { %s817_s0 = sshll.u32 %s2876_s30, 4  ;;  %s821_s7 = sadd.s32 1, %s2857_s1  ;;  %s818_s0 = int_to_ptr.vmem [resolvable:$true] %s817_s0 }
 0x135   : > { %s822_s13 = sld [smem:[#allocation6 + %s821_s7]]  ;;  %s2369_s9 = scalar_lea.hbm %s2873_s29, 16 }
 0x136   : > { %p2370_p0 = scmp.ne.s32.totalorder %s2873_s29, %s2369_s9  ;;  %s2885_s16 = scalar_lea.hbm %s3053_s5, 1024 }
 0x137   : > { %p2372_p1 = scmp.lt.u32.totalorder %s2873_s29, %s3053_s5  ;;  %p2373_p2 = scmp.lt.u32.totalorder %s2885_s16, %s2369_s9 }
 0x138   : > { %p2375_p4 = scmp.lt.u32.totalorder %s2369_s9, %s2873_s29 }
 0x139   : > { %p2374_p3 = por %p2373_p2, %p2372_p1 }
 0x13b   : > { %p2376_p5 = por %p2375_p4, %p2374_p3 }
 0x13d   : > { %p2377_p6 = pnand %p2376_p5, %p2370_p0 }
 0x13f   : > { %2380 = shalt.err (!%p2377_p6)  }
 0x140   : > { %s2381_s21 = scalar_lea.vmem %s818_s0, 16  ;;  %s2644_s15 = smov [#allocation3]  }
 0x141   : > { %p2382_p7 = scmp.ne.s32.totalorder %s818_s0, %s2381_s21  ;;  %s2383_s20 = sshll.u32 %s2644_s15, 4  ;;  %s2893_s20 = int_to_ptr.vmem [resolvable:$false] %s2383_s20 }
 0x142   : > { %s2896_s26 = scalar_lea.vmem %s2893_s20, 256  ;;  %p2386_p8 = scmp.lt.s32.totalorder %s818_s0, %s2893_s20 }
 0x143   : > { %p2387_p9 = scmp.lt.s32.totalorder %s2896_s26, %s2381_s21 }
 0x145   : > { %p2388_p10 = por %p2387_p9, %p2386_p8 }
 0x147   : > { %p2389_p11 = pnand %p2388_p10, %p2382_p7 }
 0x149   : > { %2392 = shalt.err (!%p2389_p11)  }
 0x14a   : > { %820 = dma.hbm_to_vmem [thread:$0]  %s2873_s29, 16, %s818_s0, %s1700_s28 }
 0x14b   : > { %s823_s25 = sld [smem:[#allocation7 + %s821_s7]]  ;;  %s1707_s27 = scalar_lea.sflag %s2867_s23, 1 [#allocation4] }
 0x14c   : > { %s824_s14 = scalar_lea.vmem %s3052_s4, %s822_s13 }
 0x14d   : > { %v846_v10 = vld [vmem:[%s824_s14] sm:$0x1] }
 0x14e   : > { %2039 = vst [vmem:[%s2864_s18 + $0x1] sm:$0x1] %v846_v10 }
 0x14f   : > { %872 = vsyncadd %s1707_s27, 16  ;;  %s1715_s17 = scalar_lea.vmem %s2876_s30, 1 [#allocation3]  ;;  %s1718_s29 = scalar_lea.sflag %s2867_s23, 9 [#allocation4] }
 0x150   : > { %s885_s28 = sshll.u32 %s1715_s17, 4  ;;  %s889_s0 = sadd.s32 2, %s2857_s1  ;;  %s886_s28 = int_to_ptr.vmem [resolvable:$true] %s885_s28 }
 0x151   : > { %s2040_s10 = sshll.u32 %s823_s25, 4  ;;  %s890_s7 = sld [smem:[#allocation6 + %s889_s0]] }
 0x152   : > { %s874_s2 = scalar_lea.hbm %s3053_s5, %s2040_s10 }
 0x153   : > { %s2393_s9 = scalar_lea.hbm %s874_s2, 16  ;;  %p2396_p13 = scmp.lt.u32.totalorder %s874_s2, %s3053_s5 }
 0x154   : > { %p2394_p12 = scmp.ne.s32.totalorder %s874_s2, %s2393_s9  ;;  %p2397_p0 = scmp.lt.u32.totalorder %s2885_s16, %s2393_s9 }
 0x155   : > { %p2399_p2 = scmp.lt.u32.totalorder %s2393_s9, %s874_s2 }
 0x156   : > { %p2398_p1 = por %p2397_p0, %p2396_p13 }
 0x158   : > { %p2400_p3 = por %p2399_p2, %p2398_p1 }
 0x15a   : > { %p2401_p4 = pnand %p2400_p3, %p2394_p12 }
 0x15c   : > { %2404 = shalt.err (!%p2401_p4)  }
 0x15d   : > { %s2405_s25 = scalar_lea.vmem %s886_s28, 16  ;;  %p2410_p6 = scmp.lt.s32.totalorder %s886_s28, %s2893_s20 }
 0x15e   : > { %p2406_p5 = scmp.ne.s32.totalorder %s886_s28, %s2405_s25  ;;  %p2411_p7 = scmp.lt.s32.totalorder %s2896_s26, %s2405_s25 }
 0x160   : > { %p2412_p8 = por %p2411_p7, %p2410_p6 }
 0x162   : > { %p2413_p9 = pnand %p2412_p8, %p2406_p5 }
 0x164   : > { %2416 = shalt.err (!%p2413_p9)  }
 0x165   : > { %888 = dma.hbm_to_vmem [thread:$0]  %s874_s2, 16, %s886_s28, %s1718_s29 }
 0x166   : > { %s891_s27 = sld [smem:[#allocation7 + %s889_s0]]  ;;  %s1725_s14 = scalar_lea.sflag %s2867_s23, 2 [#allocation4] }
 0x167   : > { %s892_s21 = scalar_lea.vmem %s3052_s4, %s890_s7 }
 0x168   : > { %v914_v11 = vld [vmem:[%s892_s21] sm:$0x1] }
 0x169   : > { %2046 = vst [vmem:[%s2864_s18 + $0x2] sm:$0x1] %v914_v11 }
 0x16a   : > { %940 = vsyncadd %s1725_s14, 16  ;;  %s1733_s9 = scalar_lea.vmem %s2876_s30, 2 [#allocation3]  ;;  %s1736_s29 = scalar_lea.sflag %s2867_s23, 10 [#allocation4] }
 0x16b   : > { %s953_s28 = sshll.u32 %s1733_s9, 4  ;;  %s957_s0 = sadd.s32 3, %s2857_s1  ;;  %s954_s28 = int_to_ptr.vmem [resolvable:$true] %s953_s28 }
 0x16c   : > { %s2047_s15 = sshll.u32 %s891_s27, 4  ;;  %s958_s25 = sld [smem:[#allocation6 + %s957_s0]] }
 0x16d   : > { %s942_s2 = scalar_lea.hbm %s3053_s5, %s2047_s15 }
 0x16e   : > { %s2417_s10 = scalar_lea.hbm %s942_s2, 16  ;;  %p2420_p11 = scmp.lt.u32.totalorder %s942_s2, %s3053_s5 }
 0x16f   : > { %p2418_p10 = scmp.ne.s32.totalorder %s942_s2, %s2417_s10  ;;  %p2421_p12 = scmp.lt.u32.totalorder %s2885_s16, %s2417_s10 }
 0x170   : > { %p2423_p0 = scmp.lt.u32.totalorder %s2417_s10, %s942_s2 }
 0x171   : > { %p2422_p13 = por %p2421_p12, %p2420_p11 }
 0x173   : > { %p2424_p1 = por %p2423_p0, %p2422_p13 }
 0x175   : > { %p2425_p2 = pnand %p2424_p1, %p2418_p10 }
 0x177   : > { %2428 = shalt.err (!%p2425_p2)  }
 0x178   : > { %s2429_s27 = scalar_lea.vmem %s954_s28, 16  ;;  %p2434_p4 = scmp.lt.s32.totalorder %s954_s28, %s2893_s20 }
 0x179   : > { %p2430_p3 = scmp.ne.s32.totalorder %s954_s28, %s2429_s27  ;;  %p2435_p5 = scmp.lt.s32.totalorder %s2896_s26, %s2429_s27 }
 0x17b   : > { %p2436_p6 = por %p2435_p5, %p2434_p4 }
 0x17d   : > { %p2437_p7 = pnand %p2436_p6, %p2430_p3 }
 0x17f   : > { %2440 = shalt.err (!%p2437_p7)  }
 0x180   : > { %956 = dma.hbm_to_vmem [thread:$0]  %s942_s2, 16, %s954_s28, %s1736_s29 }
 0x181   : > { %s959_s14 = sld [smem:[#allocation7 + %s957_s0]]  ;;  %s1743_s21 = scalar_lea.sflag %s2867_s23, 3 [#allocation4] }
 0x182   : > { %s960_s13 = scalar_lea.vmem %s3052_s4, %s958_s25 }
 0x183   : > { %v982_v12 = vld [vmem:[%s960_s13] sm:$0x1] }
 0x184   : > { %2053 = vst [vmem:[%s2864_s18 + $0x3] sm:$0x1] %v982_v12 }
 0x185   : > { %1008 = vsyncadd %s1743_s21, 16  ;;  %s1751_s10 = scalar_lea.vmem %s2876_s30, 3 [#allocation3]  ;;  %s1754_s29 = scalar_lea.sflag %s2867_s23, 11 [#allocation4] }
 0x186   : > { %s1021_s28 = sshll.u32 %s1751_s10, 4  ;;  %s1025_s0 = sadd.s32 4, %s2857_s1  ;;  %s1022_s28 = int_to_ptr.vmem [resolvable:$true] %s1021_s28 }
 0x187   : > { %s2054_s8 = sshll.u32 %s959_s14, 4  ;;  %s1026_s27 = sld [smem:[#allocation6 + %s1025_s0]] }
 0x188   : > { %s1010_s2 = scalar_lea.hbm %s3053_s5, %s2054_s8 }
 0x189   : > { %s2441_s15 = scalar_lea.hbm %s1010_s2, 16  ;;  %p2444_p9 = scmp.lt.u32.totalorder %s1010_s2, %s3053_s5 }
 0x18a   : > { %p2442_p8 = scmp.ne.s32.totalorder %s1010_s2, %s2441_s15  ;;  %p2445_p10 = scmp.lt.u32.totalorder %s2885_s16, %s2441_s15 }
 0x18b   : > { %p2447_p12 = scmp.lt.u32.totalorder %s2441_s15, %s1010_s2 }
 0x18c   : > { %p2446_p11 = por %p2445_p10, %p2444_p9 }
 0x18e   : > { %p2448_p13 = por %p2447_p12, %p2446_p11 }
 0x190   : > { %p2449_p0 = pnand %p2448_p13, %p2442_p8 }
 0x192   : > { %2452 = shalt.err (!%p2449_p0)  }
 0x193   : > { %s2453_s14 = scalar_lea.vmem %s1022_s28, 16  ;;  %p2458_p2 = scmp.lt.s32.totalorder %s1022_s28, %s2893_s20 }
 0x194   : > { %p2454_p1 = scmp.ne.s32.totalorder %s1022_s28, %s2453_s14  ;;  %p2459_p3 = scmp.lt.s32.totalorder %s2896_s26, %s2453_s14 }
 0x196   : > { %p2460_p4 = por %p2459_p3, %p2458_p2 }
 0x198   : > { %p2461_p5 = pnand %p2460_p4, %p2454_p1 }
 0x19a   : > { %2464 = shalt.err (!%p2461_p5)  }
 0x19b   : > { %1024 = dma.hbm_to_vmem [thread:$0]  %s1010_s2, 16, %s1022_s28, %s1754_s29 }
 0x19c   : > { %s1027_s21 = sld [smem:[#allocation7 + %s1025_s0]]  ;;  %s1761_s13 = scalar_lea.sflag %s2867_s23, 4 [#allocation4] }
 0x19d   : > { %s1028_s7 = scalar_lea.vmem %s3052_s4, %s1026_s27 }
 0x19e   : > { %v1050_v13 = vld [vmem:[%s1028_s7] sm:$0x1] }
 0x19f   : > { %2060 = vst [vmem:[%s2864_s18 + $0x4] sm:$0x1] %v1050_v13 }
 0x1a0   : > { %1076 = vsyncadd %s1761_s13, 16  ;;  %s1769_s15 = scalar_lea.vmem %s2876_s30, 4 [#allocation3]  ;;  %s1772_s29 = scalar_lea.sflag %s2867_s23, 12 [#allocation4] }
 0x1a1   : > { %s1089_s28 = sshll.u32 %s1769_s15, 4  ;;  %s1093_s0 = sadd.s32 5, %s2857_s1  ;;  %s1090_s28 = int_to_ptr.vmem [resolvable:$true] %s1089_s28 }
 0x1a2   : > { %s2061_s17 = sshll.u32 %s1027_s21, 4  ;;  %s1094_s14 = sld [smem:[#allocation6 + %s1093_s0]] }
 0x1a3   : > { %s1078_s2 = scalar_lea.hbm %s3053_s5, %s2061_s17 }
 0x1a4   : > { %s2465_s8 = scalar_lea.hbm %s1078_s2, 16  ;;  %p2468_p7 = scmp.lt.u32.totalorder %s1078_s2, %s3053_s5 }
 0x1a5   : > { %p2466_p6 = scmp.ne.s32.totalorder %s1078_s2, %s2465_s8  ;;  %p2469_p8 = scmp.lt.u32.totalorder %s2885_s16, %s2465_s8 }
 0x1a6   : > { %p2471_p10 = scmp.lt.u32.totalorder %s2465_s8, %s1078_s2 }
 0x1a7   : > { %p2470_p9 = por %p2469_p8, %p2468_p7 }
 0x1a9   : > { %p2472_p11 = por %p2471_p10, %p2470_p9 }
 0x1ab   : > { %p2473_p12 = pnand %p2472_p11, %p2466_p6 }
 0x1ad   : > { %2476 = shalt.err (!%p2473_p12)  }
 0x1ae   : > { %s2477_s21 = scalar_lea.vmem %s1090_s28, 16  ;;  %p2482_p0 = scmp.lt.s32.totalorder %s1090_s28, %s2893_s20 }
 0x1af   : > { %p2478_p13 = scmp.ne.s32.totalorder %s1090_s28, %s2477_s21  ;;  %p2483_p1 = scmp.lt.s32.totalorder %s2896_s26, %s2477_s21 }
 0x1b1   : > { %p2484_p2 = por %p2483_p1, %p2482_p0 }
 0x1b3   : > { %p2485_p3 = pnand %p2484_p2, %p2478_p13 }
 0x1b5   : > { %2488 = shalt.err (!%p2485_p3)  }
 0x1b6   : > { %1092 = dma.hbm_to_vmem [thread:$0]  %s1078_s2, 16, %s1090_s28, %s1772_s29 }
 0x1b7   : > { %s1095_s13 = sld [smem:[#allocation7 + %s1093_s0]]  ;;  %s1779_s7 = scalar_lea.sflag %s2867_s23, 5 [#allocation4] }
 0x1b8   : > { %s1096_s25 = scalar_lea.vmem %s3052_s4, %s1094_s14 }
 0x1b9   : > { %v1118_v14 = vld [vmem:[%s1096_s25] sm:$0x1] }
 0x1ba   : > { %2067 = vst [vmem:[%s2864_s18 + $0x5] sm:$0x1] %v1118_v14 }
 0x1bb   : > { %1144 = vsyncadd %s1779_s7, 16  ;;  %s1787_s8 = scalar_lea.vmem %s2876_s30, 5 [#allocation3]  ;;  %s1790_s29 = scalar_lea.sflag %s2867_s23, 13 [#allocation4] }
 0x1bc   : > { %s1157_s28 = sshll.u32 %s1787_s8, 4  ;;  %s1161_s0 = sadd.s32 6, %s2857_s1  ;;  %s1158_s28 = int_to_ptr.vmem [resolvable:$true] %s1157_s28 }
 0x1bd   : > { %s2068_s9 = sshll.u32 %s1095_s13, 4  ;;  %s1162_s21 = sld [smem:[#allocation6 + %s1161_s0]] }
 0x1be   : > { %s1146_s2 = scalar_lea.hbm %s3053_s5, %s2068_s9 }
 0x1bf   : > { %s2489_s17 = scalar_lea.hbm %s1146_s2, 16  ;;  %p2492_p5 = scmp.lt.u32.totalorder %s1146_s2, %s3053_s5 }
 0x1c0   : > { %p2490_p4 = scmp.ne.s32.totalorder %s1146_s2, %s2489_s17  ;;  %p2493_p6 = scmp.lt.u32.totalorder %s2885_s16, %s2489_s17 }
 0x1c1   : > { %p2495_p8 = scmp.lt.u32.totalorder %s2489_s17, %s1146_s2 }
 0x1c2   : > { %p2494_p7 = por %p2493_p6, %p2492_p5 }
 0x1c4   : > { %p2496_p9 = por %p2495_p8, %p2494_p7 }
 0x1c6   : > { %p2497_p10 = pnand %p2496_p9, %p2490_p4 }
 0x1c8   : > { %2500 = shalt.err (!%p2497_p10)  }
 0x1c9   : > { %s2501_s13 = scalar_lea.vmem %s1158_s28, 16  ;;  %p2506_p12 = scmp.lt.s32.totalorder %s1158_s28, %s2893_s20 }
 0x1ca   : > { %p2502_p11 = scmp.ne.s32.totalorder %s1158_s28, %s2501_s13  ;;  %p2507_p13 = scmp.lt.s32.totalorder %s2896_s26, %s2501_s13 }
 0x1cc   : > { %p2508_p0 = por %p2507_p13, %p2506_p12 }
 0x1ce   : > { %p2509_p1 = pnand %p2508_p0, %p2502_p11 }
 0x1d0   : > { %2512 = shalt.err (!%p2509_p1)  }
 0x1d1   : > { %1160 = dma.hbm_to_vmem [thread:$0]  %s1146_s2, 16, %s1158_s28, %s1790_s29 }
 0x1d2   : > { %s1163_s7 = sld [smem:[#allocation7 + %s1161_s0]]  ;;  %s1797_s25 = scalar_lea.sflag %s2867_s23, 6 [#allocation4] }
 0x1d3   : > { %s1164_s27 = scalar_lea.vmem %s3052_s4, %s1162_s21 }
 0x1d4   : > { %v1186_v15 = vld [vmem:[%s1164_s27] sm:$0x1] }
 0x1d5   : > { %2074 = vst [vmem:[%s2864_s18 + $0x6] sm:$0x1] %v1186_v15 }
 0x1d6   : > { %1212 = vsyncadd %s1797_s25, 16  ;;  %s1805_s17 = scalar_lea.vmem %s2876_s30, 6 [#allocation3]  ;;  %s1808_s29 = scalar_lea.sflag %s2867_s23, 14 [#allocation4] }
 0x1d7   : > { %s1225_s28 = sshll.u32 %s1805_s17, 4  ;;  %s1229_s0 = sadd.s32 7, %s2857_s1  ;;  %s1226_s28 = int_to_ptr.vmem [resolvable:$true] %s1225_s28 }
 0x1d8   : > { %s2075_s10 = sshll.u32 %s1163_s7, 4  ;;  %s1230_s13 = sld [smem:[#allocation6 + %s1229_s0]] }
 0x1d9   : > { %s1214_s2 = scalar_lea.hbm %s3053_s5, %s2075_s10 }
 0x1da   : > { %s2513_s9 = scalar_lea.hbm %s1214_s2, 16  ;;  %p2516_p3 = scmp.lt.u32.totalorder %s1214_s2, %s3053_s5 }
 0x1db   : > { %p2514_p2 = scmp.ne.s32.totalorder %s1214_s2, %s2513_s9  ;;  %p2517_p4 = scmp.lt.u32.totalorder %s2885_s16, %s2513_s9 }
 0x1dc   : > { %p2519_p6 = scmp.lt.u32.totalorder %s2513_s9, %s1214_s2 }
 0x1dd   : > { %p2518_p5 = por %p2517_p4, %p2516_p3 }
 0x1df   : > { %p2520_p7 = por %p2519_p6, %p2518_p5 }
 0x1e1   : > { %p2521_p8 = pnand %p2520_p7, %p2514_p2 }
 0x1e3   : > { %2524 = shalt.err (!%p2521_p8)  }
 0x1e4   : > { %s2525_s7 = scalar_lea.vmem %s1226_s28, 16  ;;  %p2530_p10 = scmp.lt.s32.totalorder %s1226_s28, %s2893_s20 }
 0x1e5   : > { %p2526_p9 = scmp.ne.s32.totalorder %s1226_s28, %s2525_s7  ;;  %p2531_p11 = scmp.lt.s32.totalorder %s2896_s26, %s2525_s7 }
 0x1e7   : > { %p2532_p12 = por %p2531_p11, %p2530_p10 }
 0x1e9   : > { %p2533_p13 = pnand %p2532_p12, %p2526_p9 }
 0x1eb   : > { %2536 = shalt.err (!%p2533_p13)  }
 0x1ec   : > { %1228 = dma.hbm_to_vmem [thread:$0]  %s1214_s2, 16, %s1226_s28, %s1808_s29 }
 0x1ed   : > { %s1231_s1 = sld [smem:[#allocation7 + %s1229_s0]]  ;;  %s1815_s25 = scalar_lea.sflag %s2867_s23, 7 [#allocation4] }
 0x1ee   : > { %s1232_s17 = scalar_lea.vmem %s3052_s4, %s1230_s13 }
 0x1ef   : > { %v1254_v16 = vld [vmem:[%s1232_s17] sm:$0x1] }
 0x1f0   : > { %2081 = vst [vmem:[%s2864_s18 + $0x7] sm:$0x1] %v1254_v16 }
 0x1f1   : > { %1280 = vsyncadd %s1815_s25, 16  ;;  %s1823_s15 = scalar_lea.vmem %s2876_s30, 7 [#allocation3]  ;;  %s1826_s29 = scalar_lea.sflag %s2867_s23, 15 [#allocation4] }
 0x1f2   : > { %s1293_s28 = sshll.u32 %s1823_s15, 4  ;;  %s1294_s28 = int_to_ptr.vmem [resolvable:$true] %s1293_s28 }
 0x1f3   : > { %s2082_s14 = sshll.u32 %s1231_s1, 4 }
 0x1f4   : > { %s1282_s2 = scalar_lea.hbm %s3053_s5, %s2082_s14 }
 0x1f5   : > { %s2537_s0 = scalar_lea.hbm %s1282_s2, 16  ;;  %p2540_p1 = scmp.lt.u32.totalorder %s1282_s2, %s3053_s5 }
 0x1f6   : > { %p2538_p0 = scmp.ne.s32.totalorder %s1282_s2, %s2537_s0  ;;  %p2541_p2 = scmp.lt.u32.totalorder %s2885_s16, %s2537_s0 }
 0x1f7   : > { %p2543_p4 = scmp.lt.u32.totalorder %s2537_s0, %s1282_s2 }
 0x1f8   : > { %p2542_p3 = por %p2541_p2, %p2540_p1 }
 0x1fa   : > { %p2544_p5 = por %p2543_p4, %p2542_p3 }
 0x1fc   : > { %p2545_p6 = pnand %p2544_p5, %p2538_p0 }
 0x1fe   : > { %2548 = shalt.err (!%p2545_p6)  }
 0x1ff   : > { %s2549_s18 = scalar_lea.vmem %s1294_s28, 16  ;;  %p2554_p8 = scmp.lt.s32.totalorder %s1294_s28, %s2893_s20 }
 0x200   : > { %p2550_p7 = scmp.ne.s32.totalorder %s1294_s28, %s2549_s18  ;;  %p2555_p9 = scmp.lt.s32.totalorder %s2896_s26, %s2549_s18 }
 0x202   : > { %p2556_p10 = por %p2555_p9, %p2554_p8 }
 0x204   : > { %p2557_p11 = pnand %p2556_p10, %p2550_p7 }
 0x206   : > { %2560 = shalt.err (!%p2557_p11)  }
 0x207   : > { %1296 = dma.hbm_to_vmem [thread:$0]  %s1282_s2, 16, %s1294_s28, %s1826_s29 }
 0x208 PF: > { %s2085_s23 = sshll.u32 %s3061_s24, 3  ;;  %v1305_v20 = vld [vmem:[%s2714_s19] sm:$0xff]  ;;  %vm1313_vm1 = vcmask 7168   ;;  %vm1326_vm2 = vcmask 0   ;;  %p2086_p12 = scmp.ne.s32.totalorder %s2702_s12, 2 }
 0x209   : > { %s1298_s30 = scalar_lea.vmem [#allocation2], %s2085_s23  ;;  %s1300_s16 = scalar_lea.vmem [#allocation3], %s2085_s23  ;;  %2153 = vlog2.f32 %v1305_v20  ;;  %v1309_v23 = vld [vmem:[%s2719_s22] sm:$0xff] }
 0x20a   : > { %v1299_v17 = vld [vmem:[%s1298_s30] sm:$0xff] }
 0x20b   : > { %v1301_v18 = vld [vmem:[%s1300_s16] sm:$0xff] }
 0x20c   : > { %v1302_v19 = vmul.f32 %v1301_v18, %v1299_v17  ;;  %v1312_v36 = vld [vmem:[#allocation8] sm:$0x1] }
 0x20e   : > { %1303 = vadd.xlane.f32.xlu0 %v1302_v19 }
 0x213   : > { %v2154_v21 = vpop.eup %2153 }
 0x214   : > { %v1307_v22 = vmul.f32 0.6931472, %v2154_v21 }
 0x29b   : > { %v1304_v24 = vpop.xlane.xlu0 %1303 }
 0x29c   : > { %v1308_v25 = vsub.f32 %v1304_v24, %v1307_v22 }
 0x29e   : > { %v1310_v26 = vmul.f32 %v1309_v23, %v1308_v25 }
 0x2a0   : > { %v1311_v27 = vmul.f32 %v1310_v26, %v1308_v25 }
 0x2a2   : > { %v1314_v28 = vsel %vm1313_vm1, %v1311_v27, 0.0 }
 0x2a3   : > { %1315 = vadd.xlane.f32.xlu0 %v1314_v28 }
 0x330   : > { %v1316_v29 = vpop.xlane.xlu0 %1315 }
 0x331   : > { %v1317_v30 = vrot.slane %v1316_v29, 4 }
 0x333   : > { %v1318_v31 = vadd.f32 %v1317_v30, %v1316_v29 }
 0x335   : > { %v1319_v32 = vrot.slane %v1318_v31, 2 }
 0x337   : > { %v1320_v33 = vadd.f32 %v1319_v32, %v1318_v31 }
 0x339   : > { %v1321_v34 = vrot.slane %v1320_v33, 1 }
 0x33b   : > { %v1322_v35 = vadd.f32 %v1321_v34, %v1320_v33 }
 0x33d   : > { %2125 = vpush %v1322_v35 }
 0x36c   : > { %1331 = sbr.rel (%p2086_p12) target bundleno = 893 (0x37d), region = 584 }
 0x36e   : > { %s2126_s19 = spop %2125 }
 0x36f   : > { %v1324_v37 = vstv %s2126_s19 }
 0x370   : > { %v1325_v38 = vadd.f32 %v1324_v37, %v1312_v36 }
 0x372   : > { %1327 = vst.msk [vmem:[#allocation8] sm:$0x1] %vm1326_vm2, %v1325_v38 }
 0x379   : > { %v1332_v39 = vld [vmem:[#allocation8] sm:$0x1] }
 0x37a   : > { %v1333_v40 = vmul.f32 0.05, %v1332_v39 }
 0x37c   : > { %1334 = vst.msk [vmem:[#allocation8] sm:$0x1] %vm1326_vm2, %v1333_v40 }
 0x37d PF: > { %p2131_p13 = scmp.eq.s32.totalorder %s2702_s12, 2  ;;  %s2645_s22 = smov [#allocation8]  }
 0x37e   : > { %s1342_s24 = sshll.u32 %s2645_s22, 4  ;;  %s1343_s24 = int_to_ptr.vmem [resolvable:$true] %s1342_s24 }
 0x37f   : > { %s2561_s20 = scalar_lea.vmem %s1343_s24, 16  ;;  %s2567_s26 = scalar_lea.vmem %s1343_s24, 32 }
 0x380   : > { %p2562_p0 = scmp.ne.s32.totalorder %s1343_s24, %s2561_s20  ;;  %p2568_p3 = scmp.lt.s32.totalorder %s1343_s24, %s1343_s24 }
 0x381   : > { %p2569_p4 = scmp.lt.s32.totalorder %s2567_s26, %s2561_s20 }
 0x382   : > { %p2563_p1 = pnand %p2562_p0, %p2131_p13 }
 0x383   : > { %p2570_p5 = por %p2569_p4, %p2568_p3 }
 0x384   : > { %p2564_p2 = pneg %p2563_p1 }
 0x386   : > { %p2571_p6 = pnand %p2570_p5, %p2564_p2 }
 0x388   : > { %2574 = shalt.err (!%p2571_p6)
}
 0x389   : > { %s2575_s25 = scalar_lea.hbm %s3054_s6, 16 }
 0x38a   : > { %p2576_p7 = scmp.ne.s32.totalorder %s3054_s6, %s2575_s25  ;;  %p2581_p10 = scmp.lt.u32.totalorder %s2575_s25, %s3054_s6 }
 0x38c   : > { %p2577_p8 = pnand %p2576_p7, %p2131_p13 }
 0x38e   : > { %p2578_p9 = pneg %p2577_p8 }
 0x390   : > { %p2583_p11 = pnand %p2581_p10, %p2578_p9 }
 0x392   : > { %2586 = shalt.err (!%p2583_p11)
}
 0x393   : > { %2128 = dma.vmem_to_hbm [thread:$0]  (%p2131_p13), %s1343_s24, 16, %s3054_s6, [#allocation9]  }
 0x394   : > { %2626 = dma.done.wait (%p2131_p13), [#allocation9], 16  }
 0x395   : > { %2628 = vsyncadd (%p2131_p13), [#allocation9], 4294967280 }
 0x396 PF: > { %s25_s11 = sadd.s32 1, %s2631_s11  }
 0x397   : > { %p22_p12 = scmp.ge.s32.totalorder %s25_s11, 5  }
 0x399   :  { %24 = sbr.rel (!%p22_p12) target bundleno = 23 (0x17), region = 916 }
 0x3a0   :  { %1355 = vsyncpa [#allocation9], 1 }
 0x3a1   :  { %1357 = vsyncpa [#allocation9 + $0x1], 1 }
 0x3a2   :  { %1358 = vsyncmov [#allocation4] }
 0x3a5   :  { %s1359_s21 = vpop.sfrf %1358 }
 0x3a6   :  { %p2091_p0 = scmp.ne.s32.totalorder %s1359_s21, 0 }
 0x3a8   :  { %1363 = shalt.err (%p2091_p0)  }
 0x3a9   :  { %1365 = vsyncmov [#allocation4 + $0x1] }
 0x3ac   :  { %s1366_s2 = vpop.sfrf %1365 }
 0x3ad   :  { %p2092_p1 = scmp.ne.s32.totalorder %s1366_s2, 0 }
 0x3af   :  { %1370 = shalt.err (%p2092_p1)  }
 0x3b0   :  { %1372 = vsyncmov [#allocation4 + $0x2] }
 0x3b3   :  { %s1373_s12 = vpop.sfrf %1372 }
 0x3b4   :  { %p2093_p13 = scmp.ne.s32.totalorder %s1373_s12, 0 }
 0x3b6   :  { %1377 = shalt.err (%p2093_p13)  }
 0x3b7   :  { %1379 = vsyncmov [#allocation4 + $0x3] }
 0x3ba   :  { %s1380_s29 = vpop.sfrf %1379 }
 0x3bb   :  { %p2094_p2 = scmp.ne.s32.totalorder %s1380_s29, 0 }
 0x3bd   :  { %1384 = shalt.err (%p2094_p2)  }
 0x3be   :  { %1386 = vsyncmov [#allocation4 + $0x4] }
 0x3c1   :  { %s1387_s11 = vpop.sfrf %1386 }
 0x3c2   :  { %p2095_p3 = scmp.ne.s32.totalorder %s1387_s11, 0 }
 0x3c4   :  { %1391 = shalt.err (%p2095_p3)  }
 0x3c5   :  { %1393 = vsyncmov [#allocation4 + $0x5] }
 0x3c8   :  { %s1394_s3 = vpop.sfrf %1393 }
 0x3c9   :  { %p2096_p4 = scmp.ne.s32.totalorder %s1394_s3, 0 }
 0x3cb   :  { %1398 = shalt.err (%p2096_p4)  }
 0x3cc   :  { %1400 = vsyncmov [#allocation4 + $0x6] }
 0x3cf   :  { %s1401_s4 = vpop.sfrf %1400 }
 0x3d0   :  { %p2097_p5 = scmp.ne.s32.totalorder %s1401_s4, 0 }
 0x3d2   :  { %1405 = shalt.err (%p2097_p5)  }
 0x3d3   :  { %1407 = vsyncmov [#allocation4 + $0x7] }
 0x3d6   :  { %s1408_s5 = vpop.sfrf %1407 }
 0x3d7   :  { %p2098_p6 = scmp.ne.s32.totalorder %s1408_s5, 0 }
 0x3d9   :  { %1412 = shalt.err (%p2098_p6)  }
 0x3da   :  { %1414 = vsyncmov [#allocation4 + $0x8] }
 0x3dd   :  { %s1415_s6 = vpop.sfrf %1414 }
 0x3de   :  { %p2099_p7 = scmp.ne.s32.totalorder %s1415_s6, 0 }
 0x3e0   :  { %1419 = shalt.err (%p2099_p7)  }
 0x3e1   :  { %1421 = vsyncmov [#allocation4 + $0x9] }
 0x3e4   :  { %s1422_s28 = vpop.sfrf %1421 }
 0x3e5   :  { %p2100_p8 = scmp.ne.s32.totalorder %s1422_s28, 0 }
 0x3e7   :  { %1426 = shalt.err (%p2100_p8)  }
 0x3e8   :  { %1428 = vsyncmov [#allocation4 + $0xa] }
 0x3eb   :  { %s1429_s0 = vpop.sfrf %1428 }
 0x3ec   :  { %p2101_p9 = scmp.ne.s32.totalorder %s1429_s0, 0 }
 0x3ee   :  { %1433 = shalt.err (%p2101_p9)  }
 0x3ef   :  { %1435 = vsyncmov [#allocation4 + $0xb] }
 0x3f2   :  { %s1436_s8 = vpop.sfrf %1435 }
 0x3f3   :  { %p2102_p10 = scmp.ne.s32.totalorder %s1436_s8, 0 }
 0x3f5   :  { %1440 = shalt.err (%p2102_p10)  }
 0x3f6   :  { %1442 = vsyncmov [#allocation4 + $0xc] }
 0x3f9   :  { %s1443_s7 = vpop.sfrf %1442 }
 0x3fa   :  { %p2103_p11 = scmp.ne.s32.totalorder %s1443_s7, 0 }
 0x3fc   :  { %1447 = shalt.err (%p2103_p11)  }
 0x3fd   :  { %1449 = vsyncmov [#allocation4 + $0xd] }
 0x400   :  { %s1450_s18 = vpop.sfrf %1449 }
 0x401   :  { %p2104_p12 = scmp.ne.s32.totalorder %s1450_s18, 0 }
 0x403   :  { %1454 = shalt.err (%p2104_p12)  }
 0x404   :  { %1456 = vsyncmov [#allocation4 + $0xe] }
 0x407   :  { %s1457_s23 = vpop.sfrf %1456 }
 0x408   :  { %p2105_p0 = scmp.ne.s32.totalorder %s1457_s23, 0 }
 0x40a   :  { %1461 = shalt.err (%p2105_p0)  }
 0x40b   :  { %1463 = vsyncmov [#allocation4 + $0xf] }
 0x40e   :  { %s1464_s30 = vpop.sfrf %1463 }
 0x40f   :  { %p2106_p1 = scmp.ne.s32.totalorder %s1464_s30, 0 }
 0x411   :  { %1468 = shalt.err (%p2106_p1)  }
 0x412   :  { %1470 = vsyncmov [#allocation4 + $0x10] }
 0x415   :  { %s1471_s16 = vpop.sfrf %1470 }
 0x416   :  { %p2107_p13 = scmp.ne.s32.totalorder %s1471_s16, 0 }
 0x418   :  { %1475 = shalt.err (%p2107_p13)  }
 0x419   :  { %1477 = vsyncmov [#allocation4 + $0x11] }
 0x41c   :  { %s1478_s19 = vpop.sfrf %1477 }
 0x41d   :  { %p2108_p2 = scmp.ne.s32.totalorder %s1478_s19, 0 }
 0x41f   :  { %1482 = shalt.err (%p2108_p2)  }
 0x420   :  { %1484 = vsyncmov [#allocation4 + $0x12] }
 0x423   :  { %s1485_s22 = vpop.sfrf %1484 }
 0x424   :  { %p2109_p3 = scmp.ne.s32.totalorder %s1485_s22, 0 }
 0x426   :  { %1489 = shalt.err (%p2109_p3)  }
 0x427   :  { %1491 = vsyncmov [#allocation4 + $0x13] }
 0x42a   :  { %s1492_s24 = vpop.sfrf %1491 }
 0x42b   :  { %p2110_p4 = scmp.ne.s32.totalorder %s1492_s24, 0 }
 0x42d   :  { %1496 = shalt.err (%p2110_p4)  }
 0x42e   :  { %1498 = vsyncmov [#allocation4 + $0x14] }
 0x431   :  { %s1499_s20 = vpop.sfrf %1498 }
 0x432   :  { %p2111_p5 = scmp.ne.s32.totalorder %s1499_s20, 0 }
 0x434   :  { %1503 = shalt.err (%p2111_p5)  }
 0x435   :  { %1505 = vsyncmov [#allocation4 + $0x15] }
 0x438   :  { %s1506_s26 = vpop.sfrf %1505 }
 0x439   :  { %p2112_p6 = scmp.ne.s32.totalorder %s1506_s26, 0 }
 0x43b   :  { %1510 = shalt.err (%p2112_p6)  }
 0x43c   :  { %1512 = vsyncmov [#allocation4 + $0x16] }
 0x43f   :  { %s1513_s13 = vpop.sfrf %1512 }
 0x440   :  { %p2113_p7 = scmp.ne.s32.totalorder %s1513_s13, 0 }
 0x442   :  { %1517 = shalt.err (%p2113_p7)  }
 0x443   :  { %1519 = vsyncmov [#allocation4 + $0x17] }
 0x446   :  { %s1520_s1 = vpop.sfrf %1519 }
 0x447   :  { %p2114_p8 = scmp.ne.s32.totalorder %s1520_s1, 0 }
 0x449   :  { %1524 = shalt.err (%p2114_p8)  }
 0x44a   :  { %1526 = vsyncmov [#allocation4 + $0x18] }
 0x44d   :  { %s1527_s25 = vpop.sfrf %1526 }
 0x44e   :  { %p2115_p9 = scmp.ne.s32.totalorder %s1527_s25, 0 }
 0x450   :  { %1531 = shalt.err (%p2115_p9)  }
 0x451   :  { %1533 = vsyncmov [#allocation4 + $0x19] }
 0x454   :  { %s1534_s27 = vpop.sfrf %1533 }
 0x455   :  { %p2116_p10 = scmp.ne.s32.totalorder %s1534_s27, 0 }
 0x457   :  { %1538 = shalt.err (%p2116_p10)  }
 0x458   :  { %1540 = vsyncmov [#allocation4 + $0x1a] }
 0x45b   :  { %s1541_s10 = vpop.sfrf %1540 }
 0x45c   :  { %p2117_p11 = scmp.ne.s32.totalorder %s1541_s10, 0 }
 0x45e   :  { %1545 = shalt.err (%p2117_p11)  }
 0x45f   :  { %1547 = vsyncmov [#allocation4 + $0x1b] }
 0x462   :  { %s1548_s17 = vpop.sfrf %1547 }
 0x463   :  { %p2118_p12 = scmp.ne.s32.totalorder %s1548_s17, 0 }
 0x465   :  { %1552 = shalt.err (%p2118_p12)  }
 0x466   :  { %1554 = vsyncmov [#allocation4 + $0x1c] }
 0x469   :  { %s1555_s14 = vpop.sfrf %1554 }
 0x46a   :  { %p2119_p0 = scmp.ne.s32.totalorder %s1555_s14, 0 }
 0x46c   :  { %1559 = shalt.err (%p2119_p0)  }
 0x46d   :  { %1561 = vsyncmov [#allocation4 + $0x1d] }
 0x470   :  { %s1562_s15 = vpop.sfrf %1561 }
 0x471   :  { %p2120_p1 = scmp.ne.s32.totalorder %s1562_s15, 0 }
 0x473   :  { %1566 = shalt.err (%p2120_p1)  }
 0x474   :  { %1568 = vsyncmov [#allocation4 + $0x1e] }
 0x477   :  { %s1569_s9 = vpop.sfrf %1568 }
 0x478   :  { %p2121_p13 = scmp.ne.s32.totalorder %s1569_s9, 0 }
 0x47a   :  { %1573 = shalt.err (%p2121_p13)  }
 0x47b   :  { %1575 = vsyncmov [#allocation4 + $0x1f] }
 0x47e   :  { %s1576_s21 = vpop.sfrf %1575 }
 0x47f   :  { %p2122_p2 = scmp.ne.s32.totalorder %s1576_s21, 0 }
 0x481   :  { %1580 = shalt.err (%p2122_p2)  }

</bundles_post_ra>
